<compile_context>
chip_gen: v6e
topology: v6e:2x2x1
jax: 0.10.0
libtpu: 0.0.40
codegen_flags: <defaults>
</compile_context>

<pallas_src>
import functools

import jax
import jax.numpy as jnp
from jax.experimental import pallas as pl
from jax.experimental.pallas import tpu as pltpu

NEG_SLOPE = 0.01   # PyTorch nn.LeakyReLU default
SUB = 8            # f32 sublane quantum
LANE_PAD = 128     # zero halo on each side of the flat spatial axis


def _leaky(v):
    return jnp.where(v > 0, v, NEG_SLOPE * v)


def _rup(n, m=SUB):
    return ((n + m - 1) // m) * m


# ------------------------------ fused kernel -------------------------------- #

def _channel_up_kernel(x_ref, w_ref, b_ref, out_ref, wide_ref, patch_ref,
                       *, H, W, convs):
    """conv_0 + LeakyReLU + Res_block x2 + LeakyReLU for one image.

    x_ref:   (1, C0p, HW)  lane-dense input
    w_ref:   (R, Kmax)     packed weight slab (all 5 matmuls)
    b_ref:   (R, 1)        packed bias slab (skip biases pre-added)
    out_ref: (1, C3p, HW)
    wide_ref:  (Cmax, HW + 2*LANE_PAD)  shift buffer with zero halo
    patch_ref: (Kmax, HW)               im2col patch
    convs: static tuple of (row_off, coutp, cinp, skip_cinp, K) per conv.
    """
    HW = H * W

    # Zero the halo once; it is never written afterwards and scratch persists
    # across grid iterations.
    @pl.when(pl.program_id(0) == 0)
    def _():
        wide_ref[...] = jnp.zeros_like(wide_ref)

    # Horizontal-wrap masks (vertical out-of-range reads land in the zero
    # halo, so only kx = 0 / 2 taps need a select).  (1, HW) broadcasts over
    # channels.
    px = jax.lax.broadcasted_iota(jnp.int32, (1, HW), 1) % W
    m_left = px >= 1        # taps with kx == 0
    m_right = px <= W - 2   # taps with kx == 2

    def conv(src, spec, skip=None):
        row_off, coutp, cinp, skip_cinp, K = spec
        # Stage the source once at an aligned lane offset; each shifted tap is
        # then a plain static window load.
        wide_ref[:cinp, LANE_PAD:LANE_PAD + HW] = src
        t = 0
        for ky in range(3):
            for kx in range(3):
                off = LANE_PAD + (ky - 1) * W + (kx - 1)
                tap = wide_ref[:cinp, off:off + HW]
                if kx == 0:
                    tap = jnp.where(m_left, tap, 0.0)
                elif kx == 2:
                    tap = jnp.where(m_right, tap, 0.0)
                # sublane-aligned, full-lane patch store
                patch_ref[t * cinp:(t + 1) * cinp, :] = tap
                t += 1
        if skip is not None:                      # folded 1x1 skip rows
            patch_ref[9 * cinp:9 * cinp + skip_cinp, :] = skip
        w = w_ref[row_off:row_off + coutp, :K]
        b = b_ref[row_off:row_off + coutp, :]
        return jnp.dot(w, patch_ref[:K, :],
                       preferred_element_type=jnp.float32) + b

    c0, c1a, c1b, c2a, c2b = convs

    x = x_ref[0].astype(jnp.float32)              # (C0p, HW)
    y0 = _leaky(conv(x, c0))                      # conv_0 + LeakyReLU
    h1 = _leaky(conv(y0, c1a))                    # res1 conv3x3 #1 + LeakyReLU
    y1 = conv(h1, c1b, skip=y0)                   # res1 conv3x3 #2 + 1x1 skip
    h2 = _leaky(conv(y1, c2a))                    # res2 conv3x3 #1 + LeakyReLU
    y2 = conv(h2, c2b, skip=y1)                   # res2 conv3x3 #2 + 1x1 skip
    out_ref[0] = _leaky(y2).astype(out_ref.dtype)


# ------------------------------ model forward ------------------------------- #

def channel_up_forward(x_nchw, params):
    """Matches channel_up.forward: NCHW in, NCHW out."""
    N, C0, H, W = x_nchw.shape
    HW = H * W
    assert HW % 128 == 0, "demo kernel assumes H*W is a multiple of 128"

    C1 = params["b0"].shape[0]
    C2 = params["res1"]["b2"].shape[0]
    C3 = params["res2"]["b2"].shape[0]
    C0p, C1p, C2p, C3p = (_rup(c) for c in (C0, C1, C2, C3))

    def pack3(w_hwio, cinp, coutp):               # (3,3,cin,cout) -> (coutp, 9*cinp)
        kh, kw, cin, cout = w_hwio.shape
        w = jnp.transpose(w_hwio, (3, 0, 1, 2))   # (cout, ky, kx, cin)
        w = jnp.pad(w, ((0, coutp - cout), (0, 0), (0, 0), (0, cinp - cin)))
        return w.reshape(coutp, kh * kw * cinp)

    def pack1(w_io, cinp, coutp):                 # (cin,cout) -> (coutp, cinp)
        cin, cout = w_io.shape
        return jnp.pad(w_io.T, ((0, coutp - cout), (0, cinp - cin)))

    def packb(b, coutp):
        return jnp.pad(b, (0, coutp - b.shape[0])).reshape(coutp, 1)

    r1, r2 = params["res1"], params["res2"]
    blocks = [
        (pack3(params["w0"], C0p, C1p), packb(params["b0"], C1p), 0),
        (pack3(r1["w1"], C1p, C2p), packb(r1["b1"], C2p), 0),
        (jnp.concatenate([pack3(r1["w2"], C2p, C2p),
                          pack1(r1["wskip"], C1p, C2p)], axis=1),
         packb(r1["b2"] + r1["bskip"], C2p), C1p),
        (pack3(r2["w1"], C2p, C3p), packb(r2["b1"], C3p), 0),
        (jnp.concatenate([pack3(r2["w2"], C3p, C3p),
                          pack1(r2["wskip"], C2p, C3p)], axis=1),
         packb(r2["b2"] + r2["bskip"], C3p), C2p),
    ]
    kmax = max(w.shape[1] for w, _, _ in blocks)
    w_slab = jnp.concatenate(
        [jnp.pad(w, ((0, 0), (0, kmax - w.shape[1]))) for w, _, _ in blocks],
        axis=0)
    b_slab = jnp.concatenate([b for _, b, _ in blocks], axis=0)

    convs, row = [], 0
    for w, _, skip_cinp in blocks:
        coutp, k = w.shape
        convs.append((row, coutp, (k - skip_cinp) // 9, skip_cinp, k))
        row += coutp
    convs = tuple(convs)

    cmax = max(C0p, C1p, C2p, C3p)
    # lane-dense input: NCHW -> (N, C0p, H*W); tiny one-time channel pad
    x_in = jnp.pad(x_nchw.reshape(N, C0, HW), ((0, 0), (0, C0p - C0), (0, 0)))

    kernel = functools.partial(_channel_up_kernel, H=H, W=W, convs=convs)

    y = pl.pallas_call(
        kernel,
        out_shape=jax.ShapeDtypeStruct((N, C3p, HW), x_nchw.dtype),
        grid=(N,),
        in_specs=[
            pl.BlockSpec((1, C0p, HW), lambda n: (n, 0, 0)),
            pl.BlockSpec(w_slab.shape, lambda n: (0, 0)),
            pl.BlockSpec(b_slab.shape, lambda n: (0, 0)),
        ],
        out_specs=pl.BlockSpec((1, C3p, HW), lambda n: (n, 0, 0)),
        scratch_shapes=[
            pltpu.VMEM((cmax, HW + 2 * LANE_PAD), jnp.float32),   # shift buffer
            pltpu.VMEM((kmax, HW), jnp.float32),                  # im2col patch
        ],
        compiler_params=pltpu.CompilerParams(
            dimension_semantics=("parallel",),
            vmem_limit_bytes=32 * 1024 * 1024,
        ),
    )(x_in, w_slab, b_slab)

    # drop channel padding (no-op here) and restore NCHW — free reshapes
    return y[:, :C3, :].reshape(N, C3, H, W)


# ------------------------------ parameter init ------------------------------ #

def _init_conv(key, kh, kw, cin, cout):
    kw_, kb_ = jax.random.split(key)
    fan_in = cin * kh * kw
    bound = 1.0 / jnp.sqrt(fan_in)
    w = jax.random.uniform(kw_, (kh, kw, cin, cout), jnp.float32, -bound, bound)
    b = jax.random.uniform(kb_, (cout,), jnp.float32, -bound, bound)
    return w, b


def init_params(key, channels, down_channels=3):
    keys = jax.random.split(key, 7)
    w0, b0 = _init_conv(keys[0], 3, 3, down_channels, channels)

    def res_params(k0, k1, k2, cin, cout):
        w1, b1 = _init_conv(k0, 3, 3, cin, cout)
        w2, b2_ = _init_conv(k1, 3, 3, cout, cout)
        ws, bs = _init_conv(k2, 1, 1, cin, cout)
        return {"w1": w1, "b1": b1, "w2": w2, "b2": b2_,
                "wskip": ws[0, 0], "bskip": bs}

    return {
        "w0": w0, "b0": b0,
        "res1": res_params(keys[1], keys[2], keys[3], channels, channels * 2),
        "res2": res_params(keys[4], keys[5], keys[6], channels * 2, channels * 4),
    }


# -------------------------------- reference --------------------------------- #

def _conv_ref(x, w_hwio, b, pad):
    y = jax.lax.conv_general_dilated(
        x, w_hwio, (1, 1), pad, dimension_numbers=("NHWC", "HWIO", "NHWC"))
    return y + b.reshape(1, 1, 1, -1)


def channel_up_ref(x_nchw, params):
    x = jnp.transpose(x_nchw, (0, 2, 3, 1))
    y = _leaky(_conv_ref(x, params["w0"], params["b0"], "SAME"))

    def res(y, p):
        h = _leaky(_conv_ref(y, p["w1"], p["b1"], "SAME"))
        m = _conv_ref(h, p["w2"], p["b2"], "SAME")
        s = _conv_ref(y, p["wskip"][None, None], p["bskip"], "VALID")
        return m + s

    y = res(y, params["res1"])
    y = _leaky(res(y, params["res2"]))
    return jnp.transpose(y, (0, 3, 1, 2))


# ----------------------------------- main ------------------------------------ #

if __name__ == "__main__":
    key = jax.random.PRNGKey(0)
    kx, kp = jax.random.split(key)

    channels, down_channels = 4, 3
    N, H, W = 2, 16, 16
    x = jax.random.normal(kx, (N, down_channels, H, W), jnp.float32)  # NCHW
    params = init_params(kp, channels, down_channels)

    out = jax.block_until_ready(channel_up_forward(x, params))
    assert out.shape == (N, channels * 4, H, W), out.shape

    ref = jax.block_until_ready(channel_up_ref(x, params))
    assert jnp.allclose(out, ref, atol=1e-4, rtol=1e-4), float(jnp.abs(out - ref).max())

    print("KERNEL_OK")
</pallas_src>

<mosaic_0001>
module attributes {stable_mosaic.version = 11 : i64} {
  func.func @_channel_up_kernel(%arg0: i32, %arg1: memref<1x8x256xf32, #tpu.memory_space<vmem>>, %arg2: memref<56x152xf32, #tpu.memory_space<vmem>>, %arg3: memref<56x1xf32, #tpu.memory_space<vmem>>, %arg4: memref<1x16x256xf32, #tpu.memory_space<vmem>>, %arg5: memref<16x512xf32, #tpu.memory_space<vmem>>, %arg6: memref<152x256xf32, #tpu.memory_space<vmem>>) attributes {dimension_semantics = [#tpu.dimension_semantics<parallel>], iteration_bounds = array<i64: 2>, scalar_prefetch = 0 : i64, scratch_operands = 2 : i64, tpu.core_type = #tpu.core_type<tc>, window_params = [{transform_indices = @transform_0, window_bounds = array<i64: 1, 8, 256>}, {pipeline_mode = #tpu.pipeline_mode<synchronous>, transform_indices = @transform_1, window_bounds = array<i64: 56, 152>}, {pipeline_mode = #tpu.pipeline_mode<synchronous>, transform_indices = @transform_2, window_bounds = array<i64: 56, 1>}, {transform_indices = @transform_3, window_bounds = array<i64: 1, 16, 256>}]} {
    %c0_i32 = arith.constant 0 : i32
    %0 = arith.cmpi eq, %arg0, %c0_i32 : i32
    %1 = arith.extui %0 : i1 to i32
    %c0_i32_0 = arith.constant 0 : i32
    %2 = arith.cmpi ne, %1, %c0_i32_0 : i32
    scf.if %2 {
      %cst_257 = arith.constant 0.000000e+00 : f32
      %296 = vector.broadcast %cst_257 : f32 to vector<16x512xf32>
      %c0_258 = arith.constant 0 : index
      %c0_259 = arith.constant 0 : index
      %297 = vector.load %arg5[%c0_258, %c0_259] : memref<16x512xf32, #tpu.memory_space<vmem>>, vector<16x512xf32>
      tpu.vector_store %arg5[%c0_258, %c0_259], %296 {strides = array<i32>} : memref<16x512xf32, #tpu.memory_space<vmem>>, vector<16x512xf32>,
    } else {
    }
    %3 = tpu.iota {dimensions = array<i32: 1>} : vector<1x256xi32>
    %c16_i32 = arith.constant 16 : i32
    %c0_i32_1 = arith.constant 0 : i32
    %4 = arith.cmpi eq, %c16_i32, %c0_i32_1 : i32
    %c1_i32 = arith.constant 1 : i32
    %5 = arith.select %4, %c1_i32, %c16_i32 : i32
    %6 = vector.broadcast %5 : i32 to vector<1x256xi32>
    %7 = arith.remsi %3, %6 : vector<1x256xi32>
    %c0_i32_2 = arith.constant 0 : i32
    %8 = vector.broadcast %c0_i32_2 : i32 to vector<1x256xi32>
    %9 = arith.cmpi ne, %7, %8 : vector<1x256xi32>
    %c0_i32_3 = arith.constant 0 : i32
    %10 = vector.broadcast %c0_i32_3 : i32 to vector<1x256xi32>
    %11 = arith.cmpi slt, %7, %10 : vector<1x256xi32>
    %c0_i32_4 = arith.constant 0 : i32
    %12 = arith.cmpi slt, %5, %c0_i32_4 : i32
    %13 = vector.broadcast %12 : i1 to vector<1x256xi1>
    %14 = vector.broadcast %13 : vector<1x256xi1> to vector<1x256xi1>
    %15 = arith.xori %11, %14 : vector<1x256xi1>
    %16 = arith.andi %15, %9 : vector<1x256xi1>
    %17 = vector.broadcast %5 : i32 to vector<1x256xi32>
    %18 = arith.addi %7, %17 : vector<1x256xi32>
    %19 = arith.select %16, %18, %7 : vector<1x256xi1>, vector<1x256xi32>
    %c1_i32_5 = arith.constant 1 : i32
    %20 = vector.broadcast %c1_i32_5 : i32 to vector<1x256xi32>
    %21 = arith.cmpi sge, %19, %20 : vector<1x256xi32>
    %c14_i32 = arith.constant 14 : i32
    %22 = vector.broadcast %c14_i32 : i32 to vector<1x256xi32>
    %23 = arith.cmpi sle, %19, %22 : vector<1x256xi32>
    %c0 = arith.constant 0 : index
    %c0_6 = arith.constant 0 : index
    %c0_7 = arith.constant 0 : index
    %24 = vector.load %arg1[%c0, %c0_6, %c0_7] : memref<1x8x256xf32, #tpu.memory_space<vmem>>, vector<1x8x256xf32>
    %25 = vector.shape_cast %24 : vector<1x8x256xf32> to vector<8x256xf32>
    %c0_8 = arith.constant 0 : index
    %c128 = arith.constant 128 : index
    %26 = vector.load %arg5[%c0_8, %c128] : memref<16x512xf32, #tpu.memory_space<vmem>>, vector<8x256xf32>
    tpu.vector_store %arg5[%c0_8, %c128], %25 {strides = array<i32>} : memref<16x512xf32, #tpu.memory_space<vmem>>, vector<8x256xf32>,
    %c0_9 = arith.constant 0 : index
    %c111 = arith.constant 111 : index
    %27 = vector.load %arg5[%c0_9, %c111] : memref<16x512xf32, #tpu.memory_space<vmem>>, vector<8x256xf32>
    %cst = arith.constant 0.000000e+00 : f32
    %28 = vector.shape_cast %21 : vector<1x256xi1> to vector<1x256xi1>
    %29 = vector.broadcast %28 : vector<1x256xi1> to vector<8x256xi1>
    %30 = vector.broadcast %cst : f32 to vector<8x256xf32>
    %31 = arith.select %29, %27, %30 : vector<8x256xi1>, vector<8x256xf32>
    %c0_10 = arith.constant 0 : index
    %c0_11 = arith.constant 0 : index
    %32 = vector.load %arg6[%c0_10, %c0_11] : memref<152x256xf32, #tpu.memory_space<vmem>>, vector<8x256xf32>
    tpu.vector_store %arg6[%c0_10, %c0_11], %31 {strides = array<i32>} : memref<152x256xf32, #tpu.memory_space<vmem>>, vector<8x256xf32>,
    %c0_12 = arith.constant 0 : index
    %c112 = arith.constant 112 : index
    %33 = vector.load %arg5[%c0_12, %c112] : memref<16x512xf32, #tpu.memory_space<vmem>>, vector<8x256xf32>
    %c8 = arith.constant 8 : index
    %c0_13 = arith.constant 0 : index
    %34 = vector.load %arg6[%c8, %c0_13] : memref<152x256xf32, #tpu.memory_space<vmem>>, vector<8x256xf32>
    tpu.vector_store %arg6[%c8, %c0_13], %33 {strides = array<i32>} : memref<152x256xf32, #tpu.memory_space<vmem>>, vector<8x256xf32>,
    %c0_14 = arith.constant 0 : index
    %c113 = arith.constant 113 : index
    %35 = vector.load %arg5[%c0_14, %c113] : memref<16x512xf32, #tpu.memory_space<vmem>>, vector<8x256xf32>
    %cst_15 = arith.constant 0.000000e+00 : f32
    %36 = vector.shape_cast %23 : vector<1x256xi1> to vector<1x256xi1>
    %37 = vector.broadcast %36 : vector<1x256xi1> to vector<8x256xi1>
    %38 = vector.broadcast %cst_15 : f32 to vector<8x256xf32>
    %39 = arith.select %37, %35, %38 : vector<8x256xi1>, vector<8x256xf32>
    %c16 = arith.constant 16 : index
    %c0_16 = arith.constant 0 : index
    %40 = vector.load %arg6[%c16, %c0_16] : memref<152x256xf32, #tpu.memory_space<vmem>>, vector<8x256xf32>
    tpu.vector_store %arg6[%c16, %c0_16], %39 {strides = array<i32>} : memref<152x256xf32, #tpu.memory_space<vmem>>, vector<8x256xf32>,
    %c0_17 = arith.constant 0 : index
    %c127 = arith.constant 127 : index
    %41 = vector.load %arg5[%c0_17, %c127] : memref<16x512xf32, #tpu.memory_space<vmem>>, vector<8x256xf32>
    %cst_18 = arith.constant 0.000000e+00 : f32
    %42 = vector.shape_cast %21 : vector<1x256xi1> to vector<1x256xi1>
    %43 = vector.broadcast %42 : vector<1x256xi1> to vector<8x256xi1>
    %44 = vector.broadcast %cst_18 : f32 to vector<8x256xf32>
    %45 = arith.select %43, %41, %44 : vector<8x256xi1>, vector<8x256xf32>
    %c24 = arith.constant 24 : index
    %c0_19 = arith.constant 0 : index
    %46 = vector.load %arg6[%c24, %c0_19] : memref<152x256xf32, #tpu.memory_space<vmem>>, vector<8x256xf32>
    tpu.vector_store %arg6[%c24, %c0_19], %45 {strides = array<i32>} : memref<152x256xf32, #tpu.memory_space<vmem>>, vector<8x256xf32>,
    %c0_20 = arith.constant 0 : index
    %c128_21 = arith.constant 128 : index
    %47 = vector.load %arg5[%c0_20, %c128_21] : memref<16x512xf32, #tpu.memory_space<vmem>>, vector<8x256xf32>
    %c32 = arith.constant 32 : index
    %c0_22 = arith.constant 0 : index
    %48 = vector.load %arg6[%c32, %c0_22] : memref<152x256xf32, #tpu.memory_space<vmem>>, vector<8x256xf32>
    tpu.vector_store %arg6[%c32, %c0_22], %47 {strides = array<i32>} : memref<152x256xf32, #tpu.memory_space<vmem>>, vector<8x256xf32>,
    %c0_23 = arith.constant 0 : index
    %c129 = arith.constant 129 : index
    %49 = vector.load %arg5[%c0_23, %c129] : memref<16x512xf32, #tpu.memory_space<vmem>>, vector<8x256xf32>
    %cst_24 = arith.constant 0.000000e+00 : f32
    %50 = vector.shape_cast %23 : vector<1x256xi1> to vector<1x256xi1>
    %51 = vector.broadcast %50 : vector<1x256xi1> to vector<8x256xi1>
    %52 = vector.broadcast %cst_24 : f32 to vector<8x256xf32>
    %53 = arith.select %51, %49, %52 : vector<8x256xi1>, vector<8x256xf32>
    %c40 = arith.constant 40 : index
    %c0_25 = arith.constant 0 : index
    %54 = vector.load %arg6[%c40, %c0_25] : memref<152x256xf32, #tpu.memory_space<vmem>>, vector<8x256xf32>
    tpu.vector_store %arg6[%c40, %c0_25], %53 {strides = array<i32>} : memref<152x256xf32, #tpu.memory_space<vmem>>, vector<8x256xf32>,
    %c0_26 = arith.constant 0 : index
    %c143 = arith.constant 143 : index
    %55 = vector.load %arg5[%c0_26, %c143] : memref<16x512xf32, #tpu.memory_space<vmem>>, vector<8x256xf32>
    %cst_27 = arith.constant 0.000000e+00 : f32
    %56 = vector.shape_cast %21 : vector<1x256xi1> to vector<1x256xi1>
    %57 = vector.broadcast %56 : vector<1x256xi1> to vector<8x256xi1>
    %58 = vector.broadcast %cst_27 : f32 to vector<8x256xf32>
    %59 = arith.select %57, %55, %58 : vector<8x256xi1>, vector<8x256xf32>
    %c48 = arith.constant 48 : index
    %c0_28 = arith.constant 0 : index
    %60 = vector.load %arg6[%c48, %c0_28] : memref<152x256xf32, #tpu.memory_space<vmem>>, vector<8x256xf32>
    tpu.vector_store %arg6[%c48, %c0_28], %59 {strides = array<i32>} : memref<152x256xf32, #tpu.memory_space<vmem>>, vector<8x256xf32>,
    %c0_29 = arith.constant 0 : index
    %c144 = arith.constant 144 : index
    %61 = vector.load %arg5[%c0_29, %c144] : memref<16x512xf32, #tpu.memory_space<vmem>>, vector<8x256xf32>
    %c56 = arith.constant 56 : index
    %c0_30 = arith.constant 0 : index
    %62 = vector.load %arg6[%c56, %c0_30] : memref<152x256xf32, #tpu.memory_space<vmem>>, vector<8x256xf32>
    tpu.vector_store %arg6[%c56, %c0_30], %61 {strides = array<i32>} : memref<152x256xf32, #tpu.memory_space<vmem>>, vector<8x256xf32>,
    %c0_31 = arith.constant 0 : index
    %c145 = arith.constant 145 : index
    %63 = vector.load %arg5[%c0_31, %c145] : memref<16x512xf32, #tpu.memory_space<vmem>>, vector<8x256xf32>
    %cst_32 = arith.constant 0.000000e+00 : f32
    %64 = vector.shape_cast %23 : vector<1x256xi1> to vector<1x256xi1>
    %65 = vector.broadcast %64 : vector<1x256xi1> to vector<8x256xi1>
    %66 = vector.broadcast %cst_32 : f32 to vector<8x256xf32>
    %67 = arith.select %65, %63, %66 : vector<8x256xi1>, vector<8x256xf32>
    %c64 = arith.constant 64 : index
    %c0_33 = arith.constant 0 : index
    %68 = vector.load %arg6[%c64, %c0_33] : memref<152x256xf32, #tpu.memory_space<vmem>>, vector<8x256xf32>
    tpu.vector_store %arg6[%c64, %c0_33], %67 {strides = array<i32>} : memref<152x256xf32, #tpu.memory_space<vmem>>, vector<8x256xf32>,
    %c0_34 = arith.constant 0 : index
    %c0_35 = arith.constant 0 : index
    %69 = vector.load %arg2[%c0_34, %c0_35] : memref<56x152xf32, #tpu.memory_space<vmem>>, vector<8x72xf32>
    %c0_36 = arith.constant 0 : index
    %c0_37 = arith.constant 0 : index
    %70 = vector.load %arg3[%c0_36, %c0_37] : memref<56x1xf32, #tpu.memory_space<vmem>>, vector<8x1xf32>
    %c0_38 = arith.constant 0 : index
    %c0_39 = arith.constant 0 : index
    %71 = vector.load %arg6[%c0_38, %c0_39] : memref<152x256xf32, #tpu.memory_space<vmem>>, vector<72x256xf32>
    %cst_40 = arith.constant dense<0.000000e+00> : vector<8x256xf32>
    %72 = tpu.matmul %69, %71, %cst_40 {dimension_numbers = #tpu.dot_dimension_numbers<[1], [0], [0], [1], [0, 0, 1, 1], [], []>} : vector<8x72xf32>, vector<72x256xf32>, vector<8x256xf32> -> vector<8x256xf32>
    %73 = vector.broadcast %70 : vector<8x1xf32> to vector<8x256xf32>
    %74 = arith.addf %72, %73 : vector<8x256xf32>
    %cst_41 = arith.constant 0.000000e+00 : f32
    %75 = vector.broadcast %cst_41 : f32 to vector<8x256xf32>
    %76 = arith.cmpf ogt, %74, %75 : vector<8x256xf32>
    %cst_42 = arith.constant 0.00999999977 : f32
    %77 = vector.broadcast %cst_42 : f32 to vector<8x256xf32>
    %78 = arith.mulf %77, %74 : vector<8x256xf32>
    %79 = arith.select %76, %74, %78 : vector<8x256xi1>, vector<8x256xf32>
    %c0_43 = arith.constant 0 : index
    %c128_44 = arith.constant 128 : index
    %80 = vector.load %arg5[%c0_43, %c128_44] : memref<16x512xf32, #tpu.memory_space<vmem>>, vector<8x256xf32>
    tpu.vector_store %arg5[%c0_43, %c128_44], %79 {strides = array<i32>} : memref<16x512xf32, #tpu.memory_space<vmem>>, vector<8x256xf32>,
    %c0_45 = arith.constant 0 : index
    %c111_46 = arith.constant 111 : index
    %81 = vector.load %arg5[%c0_45, %c111_46] : memref<16x512xf32, #tpu.memory_space<vmem>>, vector<8x256xf32>
    %cst_47 = arith.constant 0.000000e+00 : f32
    %82 = vector.shape_cast %21 : vector<1x256xi1> to vector<1x256xi1>
    %83 = vector.broadcast %82 : vector<1x256xi1> to vector<8x256xi1>
    %84 = vector.broadcast %cst_47 : f32 to vector<8x256xf32>
    %85 = arith.select %83, %81, %84 : vector<8x256xi1>, vector<8x256xf32>
    %c0_48 = arith.constant 0 : index
    %c0_49 = arith.constant 0 : index
    %86 = vector.load %arg6[%c0_48, %c0_49] : memref<152x256xf32, #tpu.memory_space<vmem>>, vector<8x256xf32>
    tpu.vector_store %arg6[%c0_48, %c0_49], %85 {strides = array<i32>} : memref<152x256xf32, #tpu.memory_space<vmem>>, vector<8x256xf32>,
    %c0_50 = arith.constant 0 : index
    %c112_51 = arith.constant 112 : index
    %87 = vector.load %arg5[%c0_50, %c112_51] : memref<16x512xf32, #tpu.memory_space<vmem>>, vector<8x256xf32>
    %c8_52 = arith.constant 8 : index
    %c0_53 = arith.constant 0 : index
    %88 = vector.load %arg6[%c8_52, %c0_53] : memref<152x256xf32, #tpu.memory_space<vmem>>, vector<8x256xf32>
    tpu.vector_store %arg6[%c8_52, %c0_53], %87 {strides = array<i32>} : memref<152x256xf32, #tpu.memory_space<vmem>>, vector<8x256xf32>,
    %c0_54 = arith.constant 0 : index
    %c113_55 = arith.constant 113 : index
    %89 = vector.load %arg5[%c0_54, %c113_55] : memref<16x512xf32, #tpu.memory_space<vmem>>, vector<8x256xf32>
    %cst_56 = arith.constant 0.000000e+00 : f32
    %90 = vector.shape_cast %23 : vector<1x256xi1> to vector<1x256xi1>
    %91 = vector.broadcast %90 : vector<1x256xi1> to vector<8x256xi1>
    %92 = vector.broadcast %cst_56 : f32 to vector<8x256xf32>
    %93 = arith.select %91, %89, %92 : vector<8x256xi1>, vector<8x256xf32>
    %c16_57 = arith.constant 16 : index
    %c0_58 = arith.constant 0 : index
    %94 = vector.load %arg6[%c16_57, %c0_58] : memref<152x256xf32, #tpu.memory_space<vmem>>, vector<8x256xf32>
    tpu.vector_store %arg6[%c16_57, %c0_58], %93 {strides = array<i32>} : memref<152x256xf32, #tpu.memory_space<vmem>>, vector<8x256xf32>,
    %c0_59 = arith.constant 0 : index
    %c127_60 = arith.constant 127 : index
    %95 = vector.load %arg5[%c0_59, %c127_60] : memref<16x512xf32, #tpu.memory_space<vmem>>, vector<8x256xf32>
    %cst_61 = arith.constant 0.000000e+00 : f32
    %96 = vector.shape_cast %21 : vector<1x256xi1> to vector<1x256xi1>
    %97 = vector.broadcast %96 : vector<1x256xi1> to vector<8x256xi1>
    %98 = vector.broadcast %cst_61 : f32 to vector<8x256xf32>
    %99 = arith.select %97, %95, %98 : vector<8x256xi1>, vector<8x256xf32>
    %c24_62 = arith.constant 24 : index
    %c0_63 = arith.constant 0 : index
    %100 = vector.load %arg6[%c24_62, %c0_63] : memref<152x256xf32, #tpu.memory_space<vmem>>, vector<8x256xf32>
    tpu.vector_store %arg6[%c24_62, %c0_63], %99 {strides = array<i32>} : memref<152x256xf32, #tpu.memory_space<vmem>>, vector<8x256xf32>,
    %c0_64 = arith.constant 0 : index
    %c128_65 = arith.constant 128 : index
    %101 = vector.load %arg5[%c0_64, %c128_65] : memref<16x512xf32, #tpu.memory_space<vmem>>, vector<8x256xf32>
    %c32_66 = arith.constant 32 : index
    %c0_67 = arith.constant 0 : index
    %102 = vector.load %arg6[%c32_66, %c0_67] : memref<152x256xf32, #tpu.memory_space<vmem>>, vector<8x256xf32>
    tpu.vector_store %arg6[%c32_66, %c0_67], %101 {strides = array<i32>} : memref<152x256xf32, #tpu.memory_space<vmem>>, vector<8x256xf32>,
    %c0_68 = arith.constant 0 : index
    %c129_69 = arith.constant 129 : index
    %103 = vector.load %arg5[%c0_68, %c129_69] : memref<16x512xf32, #tpu.memory_space<vmem>>, vector<8x256xf32>
    %cst_70 = arith.constant 0.000000e+00 : f32
    %104 = vector.shape_cast %23 : vector<1x256xi1> to vector<1x256xi1>
    %105 = vector.broadcast %104 : vector<1x256xi1> to vector<8x256xi1>
    %106 = vector.broadcast %cst_70 : f32 to vector<8x256xf32>
    %107 = arith.select %105, %103, %106 : vector<8x256xi1>, vector<8x256xf32>
    %c40_71 = arith.constant 40 : index
    %c0_72 = arith.constant 0 : index
    %108 = vector.load %arg6[%c40_71, %c0_72] : memref<152x256xf32, #tpu.memory_space<vmem>>, vector<8x256xf32>
    tpu.vector_store %arg6[%c40_71, %c0_72], %107 {strides = array<i32>} : memref<152x256xf32, #tpu.memory_space<vmem>>, vector<8x256xf32>,
    %c0_73 = arith.constant 0 : index
    %c143_74 = arith.constant 143 : index
    %109 = vector.load %arg5[%c0_73, %c143_74] : memref<16x512xf32, #tpu.memory_space<vmem>>, vector<8x256xf32>
    %cst_75 = arith.constant 0.000000e+00 : f32
    %110 = vector.shape_cast %21 : vector<1x256xi1> to vector<1x256xi1>
    %111 = vector.broadcast %110 : vector<1x256xi1> to vector<8x256xi1>
    %112 = vector.broadcast %cst_75 : f32 to vector<8x256xf32>
    %113 = arith.select %111, %109, %112 : vector<8x256xi1>, vector<8x256xf32>
    %c48_76 = arith.constant 48 : index
    %c0_77 = arith.constant 0 : index
    %114 = vector.load %arg6[%c48_76, %c0_77] : memref<152x256xf32, #tpu.memory_space<vmem>>, vector<8x256xf32>
    tpu.vector_store %arg6[%c48_76, %c0_77], %113 {strides = array<i32>} : memref<152x256xf32, #tpu.memory_space<vmem>>, vector<8x256xf32>,
    %c0_78 = arith.constant 0 : index
    %c144_79 = arith.constant 144 : index
    %115 = vector.load %arg5[%c0_78, %c144_79] : memref<16x512xf32, #tpu.memory_space<vmem>>, vector<8x256xf32>
    %c56_80 = arith.constant 56 : index
    %c0_81 = arith.constant 0 : index
    %116 = vector.load %arg6[%c56_80, %c0_81] : memref<152x256xf32, #tpu.memory_space<vmem>>, vector<8x256xf32>
    tpu.vector_store %arg6[%c56_80, %c0_81], %115 {strides = array<i32>} : memref<152x256xf32, #tpu.memory_space<vmem>>, vector<8x256xf32>,
    %c0_82 = arith.constant 0 : index
    %c145_83 = arith.constant 145 : index
    %117 = vector.load %arg5[%c0_82, %c145_83] : memref<16x512xf32, #tpu.memory_space<vmem>>, vector<8x256xf32>
    %cst_84 = arith.constant 0.000000e+00 : f32
    %118 = vector.shape_cast %23 : vector<1x256xi1> to vector<1x256xi1>
    %119 = vector.broadcast %118 : vector<1x256xi1> to vector<8x256xi1>
    %120 = vector.broadcast %cst_84 : f32 to vector<8x256xf32>
    %121 = arith.select %119, %117, %120 : vector<8x256xi1>, vector<8x256xf32>
    %c64_85 = arith.constant 64 : index
    %c0_86 = arith.constant 0 : index
    %122 = vector.load %arg6[%c64_85, %c0_86] : memref<152x256xf32, #tpu.memory_space<vmem>>, vector<8x256xf32>
    tpu.vector_store %arg6[%c64_85, %c0_86], %121 {strides = array<i32>} : memref<152x256xf32, #tpu.memory_space<vmem>>, vector<8x256xf32>,
    %c8_87 = arith.constant 8 : index
    %c0_88 = arith.constant 0 : index
    %123 = vector.load %arg2[%c8_87, %c0_88] : memref<56x152xf32, #tpu.memory_space<vmem>>, vector<8x72xf32>
    %c8_89 = arith.constant 8 : index
    %c0_90 = arith.constant 0 : index
    %124 = vector.load %arg3[%c8_89, %c0_90] : memref<56x1xf32, #tpu.memory_space<vmem>>, vector<8x1xf32>
    %c0_91 = arith.constant 0 : index
    %c0_92 = arith.constant 0 : index
    %125 = vector.load %arg6[%c0_91, %c0_92] : memref<152x256xf32, #tpu.memory_space<vmem>>, vector<72x256xf32>
    %cst_93 = arith.constant dense<0.000000e+00> : vector<8x256xf32>
    %126 = tpu.matmul %123, %125, %cst_93 {dimension_numbers = #tpu.dot_dimension_numbers<[1], [0], [0], [1], [0, 0, 1, 1], [], []>} : vector<8x72xf32>, vector<72x256xf32>, vector<8x256xf32> -> vector<8x256xf32>
    %127 = vector.broadcast %124 : vector<8x1xf32> to vector<8x256xf32>
    %128 = arith.addf %126, %127 : vector<8x256xf32>
    %cst_94 = arith.constant 0.000000e+00 : f32
    %129 = vector.broadcast %cst_94 : f32 to vector<8x256xf32>
    %130 = arith.cmpf ogt, %128, %129 : vector<8x256xf32>
    %cst_95 = arith.constant 0.00999999977 : f32
    %131 = vector.broadcast %cst_95 : f32 to vector<8x256xf32>
    %132 = arith.mulf %131, %128 : vector<8x256xf32>
    %133 = arith.select %130, %128, %132 : vector<8x256xi1>, vector<8x256xf32>
    %c0_96 = arith.constant 0 : index
    %c128_97 = arith.constant 128 : index
    %134 = vector.load %arg5[%c0_96, %c128_97] : memref<16x512xf32, #tpu.memory_space<vmem>>, vector<8x256xf32>
    tpu.vector_store %arg5[%c0_96, %c128_97], %133 {strides = array<i32>} : memref<16x512xf32, #tpu.memory_space<vmem>>, vector<8x256xf32>,
    %c0_98 = arith.constant 0 : index
    %c111_99 = arith.constant 111 : index
    %135 = vector.load %arg5[%c0_98, %c111_99] : memref<16x512xf32, #tpu.memory_space<vmem>>, vector<8x256xf32>
    %cst_100 = arith.constant 0.000000e+00 : f32
    %136 = vector.shape_cast %21 : vector<1x256xi1> to vector<1x256xi1>
    %137 = vector.broadcast %136 : vector<1x256xi1> to vector<8x256xi1>
    %138 = vector.broadcast %cst_100 : f32 to vector<8x256xf32>
    %139 = arith.select %137, %135, %138 : vector<8x256xi1>, vector<8x256xf32>
    %c0_101 = arith.constant 0 : index
    %c0_102 = arith.constant 0 : index
    %140 = vector.load %arg6[%c0_101, %c0_102] : memref<152x256xf32, #tpu.memory_space<vmem>>, vector<8x256xf32>
    tpu.vector_store %arg6[%c0_101, %c0_102], %139 {strides = array<i32>} : memref<152x256xf32, #tpu.memory_space<vmem>>, vector<8x256xf32>,
    %c0_103 = arith.constant 0 : index
    %c112_104 = arith.constant 112 : index
    %141 = vector.load %arg5[%c0_103, %c112_104] : memref<16x512xf32, #tpu.memory_space<vmem>>, vector<8x256xf32>
    %c8_105 = arith.constant 8 : index
    %c0_106 = arith.constant 0 : index
    %142 = vector.load %arg6[%c8_105, %c0_106] : memref<152x256xf32, #tpu.memory_space<vmem>>, vector<8x256xf32>
    tpu.vector_store %arg6[%c8_105, %c0_106], %141 {strides = array<i32>} : memref<152x256xf32, #tpu.memory_space<vmem>>, vector<8x256xf32>,
    %c0_107 = arith.constant 0 : index
    %c113_108 = arith.constant 113 : index
    %143 = vector.load %arg5[%c0_107, %c113_108] : memref<16x512xf32, #tpu.memory_space<vmem>>, vector<8x256xf32>
    %cst_109 = arith.constant 0.000000e+00 : f32
    %144 = vector.shape_cast %23 : vector<1x256xi1> to vector<1x256xi1>
    %145 = vector.broadcast %144 : vector<1x256xi1> to vector<8x256xi1>
    %146 = vector.broadcast %cst_109 : f32 to vector<8x256xf32>
    %147 = arith.select %145, %143, %146 : vector<8x256xi1>, vector<8x256xf32>
    %c16_110 = arith.constant 16 : index
    %c0_111 = arith.constant 0 : index
    %148 = vector.load %arg6[%c16_110, %c0_111] : memref<152x256xf32, #tpu.memory_space<vmem>>, vector<8x256xf32>
    tpu.vector_store %arg6[%c16_110, %c0_111], %147 {strides = array<i32>} : memref<152x256xf32, #tpu.memory_space<vmem>>, vector<8x256xf32>,
    %c0_112 = arith.constant 0 : index
    %c127_113 = arith.constant 127 : index
    %149 = vector.load %arg5[%c0_112, %c127_113] : memref<16x512xf32, #tpu.memory_space<vmem>>, vector<8x256xf32>
    %cst_114 = arith.constant 0.000000e+00 : f32
    %150 = vector.shape_cast %21 : vector<1x256xi1> to vector<1x256xi1>
    %151 = vector.broadcast %150 : vector<1x256xi1> to vector<8x256xi1>
    %152 = vector.broadcast %cst_114 : f32 to vector<8x256xf32>
    %153 = arith.select %151, %149, %152 : vector<8x256xi1>, vector<8x256xf32>
    %c24_115 = arith.constant 24 : index
    %c0_116 = arith.constant 0 : index
    %154 = vector.load %arg6[%c24_115, %c0_116] : memref<152x256xf32, #tpu.memory_space<vmem>>, vector<8x256xf32>
    tpu.vector_store %arg6[%c24_115, %c0_116], %153 {strides = array<i32>} : memref<152x256xf32, #tpu.memory_space<vmem>>, vector<8x256xf32>,
    %c0_117 = arith.constant 0 : index
    %c128_118 = arith.constant 128 : index
    %155 = vector.load %arg5[%c0_117, %c128_118] : memref<16x512xf32, #tpu.memory_space<vmem>>, vector<8x256xf32>
    %c32_119 = arith.constant 32 : index
    %c0_120 = arith.constant 0 : index
    %156 = vector.load %arg6[%c32_119, %c0_120] : memref<152x256xf32, #tpu.memory_space<vmem>>, vector<8x256xf32>
    tpu.vector_store %arg6[%c32_119, %c0_120], %155 {strides = array<i32>} : memref<152x256xf32, #tpu.memory_space<vmem>>, vector<8x256xf32>,
    %c0_121 = arith.constant 0 : index
    %c129_122 = arith.constant 129 : index
    %157 = vector.load %arg5[%c0_121, %c129_122] : memref<16x512xf32, #tpu.memory_space<vmem>>, vector<8x256xf32>
    %cst_123 = arith.constant 0.000000e+00 : f32
    %158 = vector.shape_cast %23 : vector<1x256xi1> to vector<1x256xi1>
    %159 = vector.broadcast %158 : vector<1x256xi1> to vector<8x256xi1>
    %160 = vector.broadcast %cst_123 : f32 to vector<8x256xf32>
    %161 = arith.select %159, %157, %160 : vector<8x256xi1>, vector<8x256xf32>
    %c40_124 = arith.constant 40 : index
    %c0_125 = arith.constant 0 : index
    %162 = vector.load %arg6[%c40_124, %c0_125] : memref<152x256xf32, #tpu.memory_space<vmem>>, vector<8x256xf32>
    tpu.vector_store %arg6[%c40_124, %c0_125], %161 {strides = array<i32>} : memref<152x256xf32, #tpu.memory_space<vmem>>, vector<8x256xf32>,
    %c0_126 = arith.constant 0 : index
    %c143_127 = arith.constant 143 : index
    %163 = vector.load %arg5[%c0_126, %c143_127] : memref<16x512xf32, #tpu.memory_space<vmem>>, vector<8x256xf32>
    %cst_128 = arith.constant 0.000000e+00 : f32
    %164 = vector.shape_cast %21 : vector<1x256xi1> to vector<1x256xi1>
    %165 = vector.broadcast %164 : vector<1x256xi1> to vector<8x256xi1>
    %166 = vector.broadcast %cst_128 : f32 to vector<8x256xf32>
    %167 = arith.select %165, %163, %166 : vector<8x256xi1>, vector<8x256xf32>
    %c48_129 = arith.constant 48 : index
    %c0_130 = arith.constant 0 : index
    %168 = vector.load %arg6[%c48_129, %c0_130] : memref<152x256xf32, #tpu.memory_space<vmem>>, vector<8x256xf32>
    tpu.vector_store %arg6[%c48_129, %c0_130], %167 {strides = array<i32>} : memref<152x256xf32, #tpu.memory_space<vmem>>, vector<8x256xf32>,
    %c0_131 = arith.constant 0 : index
    %c144_132 = arith.constant 144 : index
    %169 = vector.load %arg5[%c0_131, %c144_132] : memref<16x512xf32, #tpu.memory_space<vmem>>, vector<8x256xf32>
    %c56_133 = arith.constant 56 : index
    %c0_134 = arith.constant 0 : index
    %170 = vector.load %arg6[%c56_133, %c0_134] : memref<152x256xf32, #tpu.memory_space<vmem>>, vector<8x256xf32>
    tpu.vector_store %arg6[%c56_133, %c0_134], %169 {strides = array<i32>} : memref<152x256xf32, #tpu.memory_space<vmem>>, vector<8x256xf32>,
    %c0_135 = arith.constant 0 : index
    %c145_136 = arith.constant 145 : index
    %171 = vector.load %arg5[%c0_135, %c145_136] : memref<16x512xf32, #tpu.memory_space<vmem>>, vector<8x256xf32>
    %cst_137 = arith.constant 0.000000e+00 : f32
    %172 = vector.shape_cast %23 : vector<1x256xi1> to vector<1x256xi1>
    %173 = vector.broadcast %172 : vector<1x256xi1> to vector<8x256xi1>
    %174 = vector.broadcast %cst_137 : f32 to vector<8x256xf32>
    %175 = arith.select %173, %171, %174 : vector<8x256xi1>, vector<8x256xf32>
    %c64_138 = arith.constant 64 : index
    %c0_139 = arith.constant 0 : index
    %176 = vector.load %arg6[%c64_138, %c0_139] : memref<152x256xf32, #tpu.memory_space<vmem>>, vector<8x256xf32>
    tpu.vector_store %arg6[%c64_138, %c0_139], %175 {strides = array<i32>} : memref<152x256xf32, #tpu.memory_space<vmem>>, vector<8x256xf32>,
    %c72 = arith.constant 72 : index
    %c0_140 = arith.constant 0 : index
    %177 = vector.load %arg6[%c72, %c0_140] : memref<152x256xf32, #tpu.memory_space<vmem>>, vector<8x256xf32>
    tpu.vector_store %arg6[%c72, %c0_140], %79 {strides = array<i32>} : memref<152x256xf32, #tpu.memory_space<vmem>>, vector<8x256xf32>,
    %c16_141 = arith.constant 16 : index
    %c0_142 = arith.constant 0 : index
    %178 = vector.load %arg2[%c16_141, %c0_142] : memref<56x152xf32, #tpu.memory_space<vmem>>, vector<8x80xf32>
    %c16_143 = arith.constant 16 : index
    %c0_144 = arith.constant 0 : index
    %179 = vector.load %arg3[%c16_143, %c0_144] : memref<56x1xf32, #tpu.memory_space<vmem>>, vector<8x1xf32>
    %c0_145 = arith.constant 0 : index
    %c0_146 = arith.constant 0 : index
    %180 = vector.load %arg6[%c0_145, %c0_146] : memref<152x256xf32, #tpu.memory_space<vmem>>, vector<80x256xf32>
    %cst_147 = arith.constant dense<0.000000e+00> : vector<8x256xf32>
    %181 = tpu.matmul %178, %180, %cst_147 {dimension_numbers = #tpu.dot_dimension_numbers<[1], [0], [0], [1], [0, 0, 1, 1], [], []>} : vector<8x80xf32>, vector<80x256xf32>, vector<8x256xf32> -> vector<8x256xf32>
    %182 = vector.broadcast %179 : vector<8x1xf32> to vector<8x256xf32>
    %183 = arith.addf %181, %182 : vector<8x256xf32>
    %c0_148 = arith.constant 0 : index
    %c128_149 = arith.constant 128 : index
    %184 = vector.load %arg5[%c0_148, %c128_149] : memref<16x512xf32, #tpu.memory_space<vmem>>, vector<8x256xf32>
    tpu.vector_store %arg5[%c0_148, %c128_149], %183 {strides = array<i32>} : memref<16x512xf32, #tpu.memory_space<vmem>>, vector<8x256xf32>,
    %c0_150 = arith.constant 0 : index
    %c111_151 = arith.constant 111 : index
    %185 = vector.load %arg5[%c0_150, %c111_151] : memref<16x512xf32, #tpu.memory_space<vmem>>, vector<8x256xf32>
    %cst_152 = arith.constant 0.000000e+00 : f32
    %186 = vector.shape_cast %21 : vector<1x256xi1> to vector<1x256xi1>
    %187 = vector.broadcast %186 : vector<1x256xi1> to vector<8x256xi1>
    %188 = vector.broadcast %cst_152 : f32 to vector<8x256xf32>
    %189 = arith.select %187, %185, %188 : vector<8x256xi1>, vector<8x256xf32>
    %c0_153 = arith.constant 0 : index
    %c0_154 = arith.constant 0 : index
    %190 = vector.load %arg6[%c0_153, %c0_154] : memref<152x256xf32, #tpu.memory_space<vmem>>, vector<8x256xf32>
    tpu.vector_store %arg6[%c0_153, %c0_154], %189 {strides = array<i32>} : memref<152x256xf32, #tpu.memory_space<vmem>>, vector<8x256xf32>,
    %c0_155 = arith.constant 0 : index
    %c112_156 = arith.constant 112 : index
    %191 = vector.load %arg5[%c0_155, %c112_156] : memref<16x512xf32, #tpu.memory_space<vmem>>, vector<8x256xf32>
    %c8_157 = arith.constant 8 : index
    %c0_158 = arith.constant 0 : index
    %192 = vector.load %arg6[%c8_157, %c0_158] : memref<152x256xf32, #tpu.memory_space<vmem>>, vector<8x256xf32>
    tpu.vector_store %arg6[%c8_157, %c0_158], %191 {strides = array<i32>} : memref<152x256xf32, #tpu.memory_space<vmem>>, vector<8x256xf32>,
    %c0_159 = arith.constant 0 : index
    %c113_160 = arith.constant 113 : index
    %193 = vector.load %arg5[%c0_159, %c113_160] : memref<16x512xf32, #tpu.memory_space<vmem>>, vector<8x256xf32>
    %cst_161 = arith.constant 0.000000e+00 : f32
    %194 = vector.shape_cast %23 : vector<1x256xi1> to vector<1x256xi1>
    %195 = vector.broadcast %194 : vector<1x256xi1> to vector<8x256xi1>
    %196 = vector.broadcast %cst_161 : f32 to vector<8x256xf32>
    %197 = arith.select %195, %193, %196 : vector<8x256xi1>, vector<8x256xf32>
    %c16_162 = arith.constant 16 : index
    %c0_163 = arith.constant 0 : index
    %198 = vector.load %arg6[%c16_162, %c0_163] : memref<152x256xf32, #tpu.memory_space<vmem>>, vector<8x256xf32>
    tpu.vector_store %arg6[%c16_162, %c0_163], %197 {strides = array<i32>} : memref<152x256xf32, #tpu.memory_space<vmem>>, vector<8x256xf32>,
    %c0_164 = arith.constant 0 : index
    %c127_165 = arith.constant 127 : index
    %199 = vector.load %arg5[%c0_164, %c127_165] : memref<16x512xf32, #tpu.memory_space<vmem>>, vector<8x256xf32>
    %cst_166 = arith.constant 0.000000e+00 : f32
    %200 = vector.shape_cast %21 : vector<1x256xi1> to vector<1x256xi1>
    %201 = vector.broadcast %200 : vector<1x256xi1> to vector<8x256xi1>
    %202 = vector.broadcast %cst_166 : f32 to vector<8x256xf32>
    %203 = arith.select %201, %199, %202 : vector<8x256xi1>, vector<8x256xf32>
    %c24_167 = arith.constant 24 : index
    %c0_168 = arith.constant 0 : index
    %204 = vector.load %arg6[%c24_167, %c0_168] : memref<152x256xf32, #tpu.memory_space<vmem>>, vector<8x256xf32>
    tpu.vector_store %arg6[%c24_167, %c0_168], %203 {strides = array<i32>} : memref<152x256xf32, #tpu.memory_space<vmem>>, vector<8x256xf32>,
    %c0_169 = arith.constant 0 : index
    %c128_170 = arith.constant 128 : index
    %205 = vector.load %arg5[%c0_169, %c128_170] : memref<16x512xf32, #tpu.memory_space<vmem>>, vector<8x256xf32>
    %c32_171 = arith.constant 32 : index
    %c0_172 = arith.constant 0 : index
    %206 = vector.load %arg6[%c32_171, %c0_172] : memref<152x256xf32, #tpu.memory_space<vmem>>, vector<8x256xf32>
    tpu.vector_store %arg6[%c32_171, %c0_172], %205 {strides = array<i32>} : memref<152x256xf32, #tpu.memory_space<vmem>>, vector<8x256xf32>,
    %c0_173 = arith.constant 0 : index
    %c129_174 = arith.constant 129 : index
    %207 = vector.load %arg5[%c0_173, %c129_174] : memref<16x512xf32, #tpu.memory_space<vmem>>, vector<8x256xf32>
    %cst_175 = arith.constant 0.000000e+00 : f32
    %208 = vector.shape_cast %23 : vector<1x256xi1> to vector<1x256xi1>
    %209 = vector.broadcast %208 : vector<1x256xi1> to vector<8x256xi1>
    %210 = vector.broadcast %cst_175 : f32 to vector<8x256xf32>
    %211 = arith.select %209, %207, %210 : vector<8x256xi1>, vector<8x256xf32>
    %c40_176 = arith.constant 40 : index
    %c0_177 = arith.constant 0 : index
    %212 = vector.load %arg6[%c40_176, %c0_177] : memref<152x256xf32, #tpu.memory_space<vmem>>, vector<8x256xf32>
    tpu.vector_store %arg6[%c40_176, %c0_177], %211 {strides = array<i32>} : memref<152x256xf32, #tpu.memory_space<vmem>>, vector<8x256xf32>,
    %c0_178 = arith.constant 0 : index
    %c143_179 = arith.constant 143 : index
    %213 = vector.load %arg5[%c0_178, %c143_179] : memref<16x512xf32, #tpu.memory_space<vmem>>, vector<8x256xf32>
    %cst_180 = arith.constant 0.000000e+00 : f32
    %214 = vector.shape_cast %21 : vector<1x256xi1> to vector<1x256xi1>
    %215 = vector.broadcast %214 : vector<1x256xi1> to vector<8x256xi1>
    %216 = vector.broadcast %cst_180 : f32 to vector<8x256xf32>
    %217 = arith.select %215, %213, %216 : vector<8x256xi1>, vector<8x256xf32>
    %c48_181 = arith.constant 48 : index
    %c0_182 = arith.constant 0 : index
    %218 = vector.load %arg6[%c48_181, %c0_182] : memref<152x256xf32, #tpu.memory_space<vmem>>, vector<8x256xf32>
    tpu.vector_store %arg6[%c48_181, %c0_182], %217 {strides = array<i32>} : memref<152x256xf32, #tpu.memory_space<vmem>>, vector<8x256xf32>,
    %c0_183 = arith.constant 0 : index
    %c144_184 = arith.constant 144 : index
    %219 = vector.load %arg5[%c0_183, %c144_184] : memref<16x512xf32, #tpu.memory_space<vmem>>, vector<8x256xf32>
    %c56_185 = arith.constant 56 : index
    %c0_186 = arith.constant 0 : index
    %220 = vector.load %arg6[%c56_185, %c0_186] : memref<152x256xf32, #tpu.memory_space<vmem>>, vector<8x256xf32>
    tpu.vector_store %arg6[%c56_185, %c0_186], %219 {strides = array<i32>} : memref<152x256xf32, #tpu.memory_space<vmem>>, vector<8x256xf32>,
    %c0_187 = arith.constant 0 : index
    %c145_188 = arith.constant 145 : index
    %221 = vector.load %arg5[%c0_187, %c145_188] : memref<16x512xf32, #tpu.memory_space<vmem>>, vector<8x256xf32>
    %cst_189 = arith.constant 0.000000e+00 : f32
    %222 = vector.shape_cast %23 : vector<1x256xi1> to vector<1x256xi1>
    %223 = vector.broadcast %222 : vector<1x256xi1> to vector<8x256xi1>
    %224 = vector.broadcast %cst_189 : f32 to vector<8x256xf32>
    %225 = arith.select %223, %221, %224 : vector<8x256xi1>, vector<8x256xf32>
    %c64_190 = arith.constant 64 : index
    %c0_191 = arith.constant 0 : index
    %226 = vector.load %arg6[%c64_190, %c0_191] : memref<152x256xf32, #tpu.memory_space<vmem>>, vector<8x256xf32>
    tpu.vector_store %arg6[%c64_190, %c0_191], %225 {strides = array<i32>} : memref<152x256xf32, #tpu.memory_space<vmem>>, vector<8x256xf32>,
    %c24_192 = arith.constant 24 : index
    %c0_193 = arith.constant 0 : index
    %227 = vector.load %arg2[%c24_192, %c0_193] : memref<56x152xf32, #tpu.memory_space<vmem>>, vector<16x72xf32>
    %c24_194 = arith.constant 24 : index
    %c0_195 = arith.constant 0 : index
    %228 = vector.load %arg3[%c24_194, %c0_195] : memref<56x1xf32, #tpu.memory_space<vmem>>, vector<16x1xf32>
    %c0_196 = arith.constant 0 : index
    %c0_197 = arith.constant 0 : index
    %229 = vector.load %arg6[%c0_196, %c0_197] : memref<152x256xf32, #tpu.memory_space<vmem>>, vector<72x256xf32>
    %cst_198 = arith.constant dense<0.000000e+00> : vector<16x256xf32>
    %230 = tpu.matmul %227, %229, %cst_198 {dimension_numbers = #tpu.dot_dimension_numbers<[1], [0], [0], [1], [0, 0, 1, 1], [], []>} : vector<16x72xf32>, vector<72x256xf32>, vector<16x256xf32> -> vector<16x256xf32>
    %231 = vector.broadcast %228 : vector<16x1xf32> to vector<16x256xf32>
    %232 = arith.addf %230, %231 : vector<16x256xf32>
    %cst_199 = arith.constant 0.000000e+00 : f32
    %233 = vector.broadcast %cst_199 : f32 to vector<16x256xf32>
    %234 = arith.cmpf ogt, %232, %233 : vector<16x256xf32>
    %cst_200 = arith.constant 0.00999999977 : f32
    %235 = vector.broadcast %cst_200 : f32 to vector<16x256xf32>
    %236 = arith.mulf %235, %232 : vector<16x256xf32>
    %237 = arith.select %234, %232, %236 : vector<16x256xi1>, vector<16x256xf32>
    %c0_201 = arith.constant 0 : index
    %c128_202 = arith.constant 128 : index
    %238 = vector.load %arg5[%c0_201, %c128_202] : memref<16x512xf32, #tpu.memory_space<vmem>>, vector<16x256xf32>
    tpu.vector_store %arg5[%c0_201, %c128_202], %237 {strides = array<i32>} : memref<16x512xf32, #tpu.memory_space<vmem>>, vector<16x256xf32>,
    %c0_203 = arith.constant 0 : index
    %c111_204 = arith.constant 111 : index
    %239 = vector.load %arg5[%c0_203, %c111_204] : memref<16x512xf32, #tpu.memory_space<vmem>>, vector<16x256xf32>
    %cst_205 = arith.constant 0.000000e+00 : f32
    %240 = vector.shape_cast %21 : vector<1x256xi1> to vector<1x256xi1>
    %241 = vector.broadcast %240 : vector<1x256xi1> to vector<16x256xi1>
    %242 = vector.broadcast %cst_205 : f32 to vector<16x256xf32>
    %243 = arith.select %241, %239, %242 : vector<16x256xi1>, vector<16x256xf32>
    %c0_206 = arith.constant 0 : index
    %c0_207 = arith.constant 0 : index
    %244 = vector.load %arg6[%c0_206, %c0_207] : memref<152x256xf32, #tpu.memory_space<vmem>>, vector<16x256xf32>
    tpu.vector_store %arg6[%c0_206, %c0_207], %243 {strides = array<i32>} : memref<152x256xf32, #tpu.memory_space<vmem>>, vector<16x256xf32>,
    %c0_208 = arith.constant 0 : index
    %c112_209 = arith.constant 112 : index
    %245 = vector.load %arg5[%c0_208, %c112_209] : memref<16x512xf32, #tpu.memory_space<vmem>>, vector<16x256xf32>
    %c16_210 = arith.constant 16 : index
    %c0_211 = arith.constant 0 : index
    %246 = vector.load %arg6[%c16_210, %c0_211] : memref<152x256xf32, #tpu.memory_space<vmem>>, vector<16x256xf32>
    tpu.vector_store %arg6[%c16_210, %c0_211], %245 {strides = array<i32>} : memref<152x256xf32, #tpu.memory_space<vmem>>, vector<16x256xf32>,
    %c0_212 = arith.constant 0 : index
    %c113_213 = arith.constant 113 : index
    %247 = vector.load %arg5[%c0_212, %c113_213] : memref<16x512xf32, #tpu.memory_space<vmem>>, vector<16x256xf32>
    %cst_214 = arith.constant 0.000000e+00 : f32
    %248 = vector.shape_cast %23 : vector<1x256xi1> to vector<1x256xi1>
    %249 = vector.broadcast %248 : vector<1x256xi1> to vector<16x256xi1>
    %250 = vector.broadcast %cst_214 : f32 to vector<16x256xf32>
    %251 = arith.select %249, %247, %250 : vector<16x256xi1>, vector<16x256xf32>
    %c32_215 = arith.constant 32 : index
    %c0_216 = arith.constant 0 : index
    %252 = vector.load %arg6[%c32_215, %c0_216] : memref<152x256xf32, #tpu.memory_space<vmem>>, vector<16x256xf32>
    tpu.vector_store %arg6[%c32_215, %c0_216], %251 {strides = array<i32>} : memref<152x256xf32, #tpu.memory_space<vmem>>, vector<16x256xf32>,
    %c0_217 = arith.constant 0 : index
    %c127_218 = arith.constant 127 : index
    %253 = vector.load %arg5[%c0_217, %c127_218] : memref<16x512xf32, #tpu.memory_space<vmem>>, vector<16x256xf32>
    %cst_219 = arith.constant 0.000000e+00 : f32
    %254 = vector.shape_cast %21 : vector<1x256xi1> to vector<1x256xi1>
    %255 = vector.broadcast %254 : vector<1x256xi1> to vector<16x256xi1>
    %256 = vector.broadcast %cst_219 : f32 to vector<16x256xf32>
    %257 = arith.select %255, %253, %256 : vector<16x256xi1>, vector<16x256xf32>
    %c48_220 = arith.constant 48 : index
    %c0_221 = arith.constant 0 : index
    %258 = vector.load %arg6[%c48_220, %c0_221] : memref<152x256xf32, #tpu.memory_space<vmem>>, vector<16x256xf32>
    tpu.vector_store %arg6[%c48_220, %c0_221], %257 {strides = array<i32>} : memref<152x256xf32, #tpu.memory_space<vmem>>, vector<16x256xf32>,
    %c0_222 = arith.constant 0 : index
    %c128_223 = arith.constant 128 : index
    %259 = vector.load %arg5[%c0_222, %c128_223] : memref<16x512xf32, #tpu.memory_space<vmem>>, vector<16x256xf32>
    %c64_224 = arith.constant 64 : index
    %c0_225 = arith.constant 0 : index
    %260 = vector.load %arg6[%c64_224, %c0_225] : memref<152x256xf32, #tpu.memory_space<vmem>>, vector<16x256xf32>
    tpu.vector_store %arg6[%c64_224, %c0_225], %259 {strides = array<i32>} : memref<152x256xf32, #tpu.memory_space<vmem>>, vector<16x256xf32>,
    %c0_226 = arith.constant 0 : index
    %c129_227 = arith.constant 129 : index
    %261 = vector.load %arg5[%c0_226, %c129_227] : memref<16x512xf32, #tpu.memory_space<vmem>>, vector<16x256xf32>
    %cst_228 = arith.constant 0.000000e+00 : f32
    %262 = vector.shape_cast %23 : vector<1x256xi1> to vector<1x256xi1>
    %263 = vector.broadcast %262 : vector<1x256xi1> to vector<16x256xi1>
    %264 = vector.broadcast %cst_228 : f32 to vector<16x256xf32>
    %265 = arith.select %263, %261, %264 : vector<16x256xi1>, vector<16x256xf32>
    %c80 = arith.constant 80 : index
    %c0_229 = arith.constant 0 : index
    %266 = vector.load %arg6[%c80, %c0_229] : memref<152x256xf32, #tpu.memory_space<vmem>>, vector<16x256xf32>
    tpu.vector_store %arg6[%c80, %c0_229], %265 {strides = array<i32>} : memref<152x256xf32, #tpu.memory_space<vmem>>, vector<16x256xf32>,
    %c0_230 = arith.constant 0 : index
    %c143_231 = arith.constant 143 : index
    %267 = vector.load %arg5[%c0_230, %c143_231] : memref<16x512xf32, #tpu.memory_space<vmem>>, vector<16x256xf32>
    %cst_232 = arith.constant 0.000000e+00 : f32
    %268 = vector.shape_cast %21 : vector<1x256xi1> to vector<1x256xi1>
    %269 = vector.broadcast %268 : vector<1x256xi1> to vector<16x256xi1>
    %270 = vector.broadcast %cst_232 : f32 to vector<16x256xf32>
    %271 = arith.select %269, %267, %270 : vector<16x256xi1>, vector<16x256xf32>
    %c96 = arith.constant 96 : index
    %c0_233 = arith.constant 0 : index
    %272 = vector.load %arg6[%c96, %c0_233] : memref<152x256xf32, #tpu.memory_space<vmem>>, vector<16x256xf32>
    tpu.vector_store %arg6[%c96, %c0_233], %271 {strides = array<i32>} : memref<152x256xf32, #tpu.memory_space<vmem>>, vector<16x256xf32>,
    %c0_234 = arith.constant 0 : index
    %c144_235 = arith.constant 144 : index
    %273 = vector.load %arg5[%c0_234, %c144_235] : memref<16x512xf32, #tpu.memory_space<vmem>>, vector<16x256xf32>
    %c112_236 = arith.constant 112 : index
    %c0_237 = arith.constant 0 : index
    %274 = vector.load %arg6[%c112_236, %c0_237] : memref<152x256xf32, #tpu.memory_space<vmem>>, vector<16x256xf32>
    tpu.vector_store %arg6[%c112_236, %c0_237], %273 {strides = array<i32>} : memref<152x256xf32, #tpu.memory_space<vmem>>, vector<16x256xf32>,
    %c0_238 = arith.constant 0 : index
    %c145_239 = arith.constant 145 : index
    %275 = vector.load %arg5[%c0_238, %c145_239] : memref<16x512xf32, #tpu.memory_space<vmem>>, vector<16x256xf32>
    %cst_240 = arith.constant 0.000000e+00 : f32
    %276 = vector.shape_cast %23 : vector<1x256xi1> to vector<1x256xi1>
    %277 = vector.broadcast %276 : vector<1x256xi1> to vector<16x256xi1>
    %278 = vector.broadcast %cst_240 : f32 to vector<16x256xf32>
    %279 = arith.select %277, %275, %278 : vector<16x256xi1>, vector<16x256xf32>
    %c128_241 = arith.constant 128 : index
    %c0_242 = arith.constant 0 : index
    %280 = vector.load %arg6[%c128_241, %c0_242] : memref<152x256xf32, #tpu.memory_space<vmem>>, vector<16x256xf32>
    tpu.vector_store %arg6[%c128_241, %c0_242], %279 {strides = array<i32>} : memref<152x256xf32, #tpu.memory_space<vmem>>, vector<16x256xf32>,
    %c144_243 = arith.constant 144 : index
    %c0_244 = arith.constant 0 : index
    %281 = vector.load %arg6[%c144_243, %c0_244] : memref<152x256xf32, #tpu.memory_space<vmem>>, vector<8x256xf32>
    tpu.vector_store %arg6[%c144_243, %c0_244], %183 {strides = array<i32>} : memref<152x256xf32, #tpu.memory_space<vmem>>, vector<8x256xf32>,
    %c40_245 = arith.constant 40 : index
    %c0_246 = arith.constant 0 : index
    %282 = vector.load %arg2[%c40_245, %c0_246] : memref<56x152xf32, #tpu.memory_space<vmem>>, vector<16x152xf32>
    %c40_247 = arith.constant 40 : index
    %c0_248 = arith.constant 0 : index
    %283 = vector.load %arg3[%c40_247, %c0_248] : memref<56x1xf32, #tpu.memory_space<vmem>>, vector<16x1xf32>
    %c0_249 = arith.constant 0 : index
    %c0_250 = arith.constant 0 : index
    %284 = vector.load %arg6[%c0_249, %c0_250] : memref<152x256xf32, #tpu.memory_space<vmem>>, vector<152x256xf32>
    %cst_251 = arith.constant dense<0.000000e+00> : vector<16x256xf32>
    %285 = tpu.matmul %282, %284, %cst_251 {dimension_numbers = #tpu.dot_dimension_numbers<[1], [0], [0], [1], [0, 0, 1, 1], [], []>} : vector<16x152xf32>, vector<152x256xf32>, vector<16x256xf32> -> vector<16x256xf32>
    %286 = vector.broadcast %283 : vector<16x1xf32> to vector<16x256xf32>
    %287 = arith.addf %285, %286 : vector<16x256xf32>
    %cst_252 = arith.constant 0.000000e+00 : f32
    %288 = vector.broadcast %cst_252 : f32 to vector<16x256xf32>
    %289 = arith.cmpf ogt, %287, %288 : vector<16x256xf32>
    %cst_253 = arith.constant 0.00999999977 : f32
    %290 = vector.broadcast %cst_253 : f32 to vector<16x256xf32>
    %291 = arith.mulf %290, %287 : vector<16x256xf32>
    %292 = arith.select %289, %287, %291 : vector<16x256xi1>, vector<16x256xf32>
    %c0_254 = arith.constant 0 : index
    %c0_255 = arith.constant 0 : index
    %c0_256 = arith.constant 0 : index
    %293 = vector.load %arg4[%c0_254, %c0_255, %c0_256] : memref<1x16x256xf32, #tpu.memory_space<vmem>>, vector<1x16x256xf32>
    %294 = vector.shape_cast %293 : vector<1x16x256xf32> to vector<16x256xf32>
    %295 = vector.shape_cast %292 : vector<16x256xf32> to vector<1x16x256xf32>
    tpu.vector_store %arg4[%c0_254, %c0_255, %c0_256], %295 {strides = array<i32>} : memref<1x16x256xf32, #tpu.memory_space<vmem>>, vector<1x16x256xf32>,
    return
  }
  func.func @transform_0(%arg0: i32) -> (i32, i32, i32) {
    %c0_i32 = arith.constant 0 : i32
    %c0_i32_0 = arith.constant 0 : i32
    %c0_i32_1 = arith.constant 0 : i32
    return %arg0, %c0_i32, %c0_i32_0 : i32, i32, i32
  }
  func.func @transform_1(%arg0: i32) -> (i32, i32) {
    %c0_i32 = arith.constant 0 : i32
    %c0_i32_0 = arith.constant 0 : i32
    %c0_i32_1 = arith.constant 0 : i32
    return %c0_i32, %c0_i32_0 : i32, i32
  }
  func.func @transform_2(%arg0: i32) -> (i32, i32) {
    %c0_i32 = arith.constant 0 : i32
    %c0_i32_0 = arith.constant 0 : i32
    %c0_i32_1 = arith.constant 0 : i32
    return %c0_i32, %c0_i32_0 : i32, i32
  }
  func.func @transform_3(%arg0: i32) -> (i32, i32, i32) {
    %c0_i32 = arith.constant 0 : i32
    %c0_i32_0 = arith.constant 0 : i32
    %c0_i32_1 = arith.constant 0 : i32
    return %arg0, %c0_i32, %c0_i32_0 : i32, i32, i32
  }
}

</mosaic_0001>

<bundles_post_ra>
// kernel: tpu_custom_call.1
= control target key start
LH: loop header
LB: loop body
LE: loop exit
PB: predicated region body
PF: predicated region fallthrough
CT: control target
= control target key end

     0   :  { %8 = vsyncpa [#allocation5], 0  ;;  %s2956_s0 = inlined_call_operand.vmem [shape: f32[2,8,256], index: 0, kind: input, shape index: {}]   ;;  %s2957_s1 = inlined_call_operand.hbm [shape: f32[56,152], index: 1, kind: input, shape index: {}]   ;;  %s2958_s2 = inlined_call_operand.vmem [shape: f32[56,1], index: 2, kind: input, shape index: {}]   ;;  %s2959_s3 = inlined_call_operand.hbm [shape: f32[2,16,256], index: 3, kind: output, shape index: {}]  }
   0x1   :  { %9 = vsyncpa [#allocation6], 0 }
   0x2   :  { %11 = vsyncpa [#allocation6 + $0x1], 0  ;;  %s2193_s12 = smov 0   ;;  %s2195_s13 = smov 0  }
   0x3   :  { %s2197_s14 = smov 0   ;;  %s2199_s15 = smov 0  }
   0x4 LB: > { %s2214_s16 = sadd.s32 4294967295, %s2155_s15   ;;  %s1903_s17 = sadd.s32 4294967294, %s2155_s15   ;;  %s2155_s15 = sphi %s2199_s15, %s2976_s15   ;;  %s2151_s14 = sphi %s2197_s14, %s2975_s14   ;;  %s2147_s13 = sphi %s2195_s13, %s2974_s13   ;;  %s2143_s12 = sphi %s2193_s12, %s2973_s12  }
   0x5   : > { %s2218_s18 = sadd.s32 1, %s2155_s15   ;;  %s92_s19 = sadd.s32 1, %s2151_s14 }
   0x6   : > { %s89_s20 = ssub.s32 %s2155_s15, %s2218_s18  ;;  %p102_p0 = scmp.ne.s32.totalorder %s2151_s14, %s2147_s13 }
   0x7   : > { %p90_p1 = scmp.eq.s32.totalorder %s89_s20, 0  ;;  %p103_p2 = scmp.eq.s32.totalorder %s2214_s16, 1 }
   0x8   : > { %p108_p3 = scmp.ne.s32.totalorder %s2147_s13, %s2143_s12  ;;  %p109_p4 = scmp.eq.s32.totalorder %s1903_s17, 1 }
   0x9   : > { %s2229_s21 = scalar_select %p90_p1, %s2151_s14, %s92_s19  }
   0xa   : > { %p2231_p5 = por %p103_p2, %p102_p0  ;;  %p2235_p6 = por %p109_p4, %p108_p3 }
   0xb   : > { %p1904_p7 = scmp.ge.s32.totalorder %s2155_s15, 1  ;;  %p116_p8 = scmp.lt.s32.totalorder %s2155_s15, 3 }
   0xc   : > { %s2961_s23 = scalar_select %p2235_p6, 1, 0 }
   0xd   : > { %p2013_p10 = scmp.eq.s32.totalorder %s2214_s16, 0  ;;  %p2243_p11 = pnand %p1904_p7, %p116_p8 }
   0xe   : > { %s2157_s25 = smov [#allocation4]  }
   0xf   : > { %s128_s26 = sshll.u32 %s2157_s25, 4  ;;  %p2005_p12 = pneg %p2243_p11  ;;  %s129_s26 = int_to_ptr.vmem [resolvable:$true] %s128_s26 }
  0x10   : > { %s2076_s27 = scalar_lea.vmem %s129_s26, 1792  ;;  %p2084_p4 = scmp.lt.s32.totalorder %s129_s26, %s129_s26 }
  0x11   : > { %p2006_p13 = pnand %p2013_p10, %p2005_p12  ;;  %p2077_p1 = scmp.ne.s32.totalorder %s129_s26, %s2076_s27 }
  0x12   : > { %p2085_p9 = scmp.lt.s32.totalorder %s2076_s27, %s2076_s27 }
  0x13   : > { %p2067_p0 = pneg %p2006_p13 }
  0x14   : > { %p2086_p6 = por %p2085_p9, %p2084_p4 }
  0x15   : > { %p2079_p2 = pnand %p2077_p1, %p2067_p0 }
  0x17   : > { %p2080_p3 = pneg %p2079_p2 }
  0x19   : > { %p2087_p7 = pnand %p2086_p6, %p2080_p3 }
  0x1b   : > { %2090 = shalt.err (!%p2087_p7)
}
  0x1c   : > { %s2158_s28 = smov 256   ;;  %s2159_s29 = smov 16  }
  0x1d   : > { %2008 = dma.hbm_to_vmem [thread:$0]  (!%p2006_p13), %s2957_s1, 1792, %s129_s26, [#allocation5], %s2158_s28, %s2158_s28, %s2159_s29  }
  0x1e   : > { %155 = sbr.rel (%p2243_p11) target bundleno = 1864 (0x748), region = 32 }
  0x23   : > { %2134 = dma.done.wait (%p2013_p10), [#allocation5], 1792  }
  0x24   : > { %2136 = vsyncadd (%p2013_p10), [#allocation5], 4294965504  ;;  %s176_s5 = sand.u32 1, %s2147_s13   ;;  %p179_p6 = scmp.lt.s32.totalorder %s2214_s16, 1 }
  0x25   : > { %s1909_s6 = sshll.u32 %s176_s5, 5  ;;  %p2963_p8 = scmp.ne.s32.totalorder %s2214_s16, 0 }
  0x26   : > { %s180_s7 = scalar_select %p179_p6, %s2214_s16, 1 }
  0x27   : > { %s2268_s17 = scalar_lea.vmem [#allocation7], %s1909_s6  ;;  %187 = sbr.rel (%p2963_p8) target bundleno = 47 (0x2f), region = 40 }
  0x28   : > { %s1925_s8 = sshll.u32 %s180_s7, 4 }
  0x29   : > { %s183_s11 = scalar_lea.vmem %s2956_s0, %s1925_s8 }
  0x2c   : > { %v2160_v0 = vmov 0.0  }
  0x2d   : > { %188 = vst [vmem:[#allocation2 + $0x30] sm:$0xff] %v2160_v0  ;;  %191 = vst [vmem:[#allocation2 + $0x10] sm:$0xff] %v2160_v0 }
  0x2e   : > { %192 = vst [vmem:[#allocation2 + $0x8] sm:$0xff] %v2160_v0  ;;  %195 = vst [vmem:[#allocation2 + $0x38] sm:$0xff] %v2160_v0 }
  0x2f PF: > { %v2274_v2 = vld [vmem:[%s183_s11] sm:$0xff]  ;;  %s2161_s19 = smov 111   ;;  %v2280_v3 = vld [vmem:[%s183_s11 + $0x8] sm:$0xff]  ;;  %s2162_s20 = smov 112   ;;  %v2167_v5 = vmov 0.0   ;;  %v2168_v6 = vmov 0   ;;  %v196_v8 = vlaneseq }
  0x30   : > { %392 = vrot.lane.b32.xlu1 %v2274_v2, %s2161_s19  ;;  %s2163_s24 = smov 113   ;;  %s2164_s25 = smov 127   ;;  %500 = vmatprep.mubr.f32.mxu0 %v2167_v5  ;;  %v408_v7 = vld [vmem:[%s2958_s2] sm:$0xff]  ;;  %vm398_vm0 = vcmask 908288   ;;  %vm379_vm3 = vcmask 916480   ;;  %vm358_vm4 = vcmask 924672  }
  0x31   : > { %s2165_s26 = smov 1   ;;  %s2166_s27 = smov 15   ;;  %1310 = vmatprep.mubr.f32.mxu1 %v2167_v5  ;;  %2063 = vset.pattern.permute.xlu0 %v2168_v6  ;;  %v197_v9 = vand.u32 127, %v196_v8  ;;  %vm337_vm7 = vcmask 1039360   ;;  %vm312_vm8 = vcmask 7168   ;;  %vm291_vm9 = vcmask 121856  }
  0x32   : > { %2064 = vset.pattern.permute.xlu1 %v2168_v6  ;;  %s2169_s28 = smov 16   ;;  %s2170_s29 = smov 17   ;;  %vm268_vm10 = vcmask 130048   ;;  %vm247_vm11 = vcmask 138240   ;;  %v407_v57 = vld [vmem:[#allocation4] sm:$0xff]  ;;  %vm432_vm12 = vcmask 588800  }
  0x33   : > { %v198_v10 = vadd.s32 128, %v197_v9  ;;  %v203_v15 = vand.u32 15, %v197_v9  ;;  %v676_v6 = vld [vmem:[%s2958_s2 + $0x8] sm:$0xff]  ;;  %v1661_v29 = vld [vmem:[#allocation4 + $0x50] sm:$0xff]  ;;  %s2171_s9 = smov [#allocation7]  }
  0x34   : > { %v2272_v1 = vld [vmem:[#allocation2 + $0x10] sm:$0xff]  ;;  %375 = vrot.lane.b32.xlu1 %v2280_v3, %s2162_s20  ;;  %s2095_s10 = sshll.u32 %s2171_s9, 4  ;;  %s2096_s10 = int_to_ptr.vmem [resolvable:$false] %s2095_s10 }
  0x35   : > { %396 = vrot.lane.b32.xlu0 %v2272_v1, %s2161_s19  ;;  %v2306_v4 = vld [vmem:[#allocation2 + $0x30] sm:$0xff]  ;;  %v210_v13 = vand.u32 15, %v198_v10  ;;  %vm2349_vm2 = vcmp.le.s32.totalorder %v203_v15, 14  ;;  %vm2368_vm6 = vcmp.ge.s32.totalorder %v203_v15, 1  ;;  %s2097_s11 = scalar_lea.vmem %s2096_s10, 1024 }
  0x37   : > { %vm2345_vm1 = vcmp.le.s32.totalorder %v210_v13, 14  ;;  %vm2360_vm5 = vcmp.ge.s32.totalorder %v210_v13, 1 }
  0x38   : > { %373 = vrot.lane.b32.xlu1 %v2274_v2, %s2162_s20 }
  0x39   : > { %377 = vrot.lane.b32.xlu0 %v2272_v1, %s2162_s20 }
  0x3c   : > { %356 = vrot.lane.b32.xlu1 %v2272_v1, %s2163_s24 }
  0x3d   : > { %394 = vrot.lane.b32.xlu0 %v2280_v3, %s2161_s19 }
  0x40   : > { %333 = vrot.lane.b32.xlu1 %v2280_v3, %s2164_s25 }
  0x41   : > { %354 = vrot.lane.b32.xlu0 %v2280_v3, %s2163_s24 }
  0x44   : > { %331 = vrot.lane.b32.xlu1 %v2274_v2, %s2164_s25 }
  0x45   : > { %352 = vrot.lane.b32.xlu0 %v2274_v2, %s2163_s24 }
  0x48   : > { %310 = vrot.lane.b32.xlu1 %v2280_v3, %s2165_s26 }
  0x49   : > { %335 = vrot.lane.b32.xlu0 %v2272_v1, %s2164_s25 }
  0x4c   : > { %287 = vrot.lane.b32.xlu1 %v2274_v2, %s2166_s27 }
  0x4d   : > { %308 = vrot.lane.b32.xlu0 %v2274_v2, %s2165_s26 }
  0x50   : > { %285 = vrot.lane.b32.xlu1 %v2306_v4, %s2166_s27 }
  0x51   : > { %306 = vrot.lane.b32.xlu0 %v2306_v4, %s2165_s26 }
  0x54   : > { %266 = vrot.lane.b32.xlu1 %v2280_v3, %s2169_s28 }
  0x55   : > { %289 = vrot.lane.b32.xlu0 %v2280_v3, %s2166_s27 }
  0x58   : > { %243 = vrot.lane.b32.xlu1 %v2274_v2, %s2170_s29 }
  0x59   : > { %264 = vrot.lane.b32.xlu0 %v2274_v2, %s2169_s28 }
  0x5c   : > { %241 = vrot.lane.b32.xlu1 %v2306_v4, %s2170_s29 }
  0x5d   : > { %262 = vrot.lane.b32.xlu0 %v2306_v4, %s2169_s28 }
  0x60   : > { %665 = vrot.lane.b32.xlu1 %v2272_v1, %s2161_s19 }
  0x61   : > { %245 = vrot.lane.b32.xlu0 %v2280_v3, %s2170_s29 }
  0x64   : > { %627 = vrot.lane.b32.xlu1 %v2272_v1, %s2163_s24 }
  0x65   : > { %429 = vperm.xlu0 %2063, %v408_v7  }
  0x68   : > { %559 = vrot.lane.b32.xlu1 %v2306_v4, %s2166_s27 }
  0x69   : > { %647 = vrot.lane.b32.xlu0 %v2272_v1, %s2162_s20 }
  0x6d   : > { %607 = vrot.lane.b32.xlu0 %v2272_v1, %s2164_s25 }
  0x71   : > { %579 = vrot.lane.b32.xlu0 %v2306_v4, %s2165_s26 }
  0xa2   : > { %v393_v12 = vpop.permute.xlu1 %392 }
  0xa6   : > { %v376_v16 = vpop.permute.xlu1 %375 }
  0xa7   : > { %v397_v11 = vpop.permute.xlu0 %396 }
  0xaa   : > { %v374_v20 = vpop.permute.xlu1 %373 }
  0xab   : > { %v378_v14 = vpop.permute.xlu0 %377  ;;  %v380_v26 = vsel %vm379_vm3, %v374_v20, %v376_v16 }
  0xac   : > { %v381_v23 = vsel %vm379_vm3, %v376_v16, %v378_v14 }
  0xae   : > { %v357_v27 = vpop.permute.xlu1 %356 }
  0xaf   : > { %v395_v18 = vpop.permute.xlu0 %394 }
  0xb0   : > { %v400_v21 = vsel %vm398_vm0, %v395_v18, %v397_v11  ;;  %v399_v22 = vsel %vm398_vm0, %v393_v12, %v395_v18 }
  0xb1   : > { %1927 = vmatprep.subr.msk.mxu0 %vm2345_vm1, %v400_v21 }
  0xb2   : > { %1928 = vmatpush1.msk.msra.mxu0 %vm2349_vm2, %v399_v22  ;;  %v334_v31 = vpop.permute.xlu1 %333 }
  0xb3   : > { %452 = vmatprep.subr.mxu0 %v381_v23  ;;  %v355_v25 = vpop.permute.xlu0 %354 }
  0xb4   : > { %453 = vmatpush1.msra.mxu0 %v380_v26  ;;  %v360_v28 = vsel %vm358_vm4, %v355_v25, %v357_v27 }
  0xb5   : > { %1929 = vmatprep.subr.msk.mxu0 %vm2360_vm5, %v360_v28 }
  0xb6   : > { %v332_v34 = vpop.permute.xlu1 %331 }
  0xb7   : > { %v353_v30 = vpop.permute.xlu0 %352  ;;  %v338_v36 = vsel %vm337_vm7, %v332_v34, %v334_v31 }
  0xb8   : > { %v359_v32 = vsel %vm358_vm4, %v353_v30, %v355_v25 }
  0xb9   : > { %1930 = vmatpush1.msk.msra.mxu0 %vm2368_vm6, %v359_v32 }
  0xba   : > { %v311_v38 = vpop.permute.xlu1 %310 }
  0xbb   : > { %v336_v33 = vpop.permute.xlu0 %335 }
  0xbc   : > { %v339_v35 = vsel %vm337_vm7, %v334_v31, %v336_v33 }
  0xbd   : > { %1931 = vmatprep.subr.msk.mxu0 %vm2345_vm1, %v339_v35 }
  0xbe   : > { %1932 = vmatpush1.msk.msra.mxu0 %vm2349_vm2, %v338_v36  ;;  %v288_v41 = vpop.permute.xlu1 %287 }
  0xbf   : > { %v309_v37 = vpop.permute.xlu0 %308  ;;  %458 = vmatprep.subr.mxu0 %v2280_v3 }
  0xc0   : > { %v314_v39 = vsel %vm312_vm8, %v309_v37, %v311_v38  ;;  %459 = vmatpush1.msra.mxu0 %v2274_v2 }
  0xc1   : > { %1933 = vmatprep.subr.msk.mxu0 %vm2360_vm5, %v314_v39 }
  0xc2   : > { %v286_v44 = vpop.permute.xlu1 %285 }
  0xc3   : > { %v307_v40 = vpop.permute.xlu0 %306  ;;  %v292_v46 = vsel %vm291_vm9, %v286_v44, %v288_v41 }
  0xc4   : > { %v313_v42 = vsel %vm312_vm8, %v307_v40, %v309_v37 }
  0xc5   : > { %1934 = vmatpush1.msk.msra.mxu0 %vm2368_vm6, %v313_v42 }
  0xc6   : > { %v267_v48 = vpop.permute.xlu1 %266 }
  0xc7   : > { %v290_v43 = vpop.permute.xlu0 %289 }
  0xc8   : > { %v293_v45 = vsel %vm291_vm9, %v288_v41, %v290_v43 }
  0xc9   : > { %1935 = vmatprep.subr.msk.mxu0 %vm2345_vm1, %v293_v45 }
  0xca   : > { %1936 = vmatpush1.msk.msra.mxu0 %vm2349_vm2, %v292_v46  ;;  %v244_v51 = vpop.permute.xlu1 %243 }
  0xcb   : > { %v265_v47 = vpop.permute.xlu0 %264 }
  0xcc   : > { %v270_v49 = vsel %vm268_vm10, %v265_v47, %v267_v48 }
  0xcd   : > { %464 = vmatprep.subr.mxu0 %v270_v49 }
  0xce   : > { %v242_v54 = vpop.permute.xlu1 %241 }
  0xcf   : > { %v263_v50 = vpop.permute.xlu0 %262  ;;  %v248_v56 = vsel %vm247_vm11, %v242_v54, %v244_v51 }
  0xd0   : > { %v269_v52 = vsel %vm268_vm10, %v263_v50, %v265_v47  ;;  %v675_v50 = vld [vmem:[#allocation4 + $0x10] sm:$0xff] }
  0xd1   : > { %465 = vmatpush1.msra.mxu0 %v269_v52 }
  0xd2   : > { %v666_v8 = vpop.permute.xlu1 %665 }
  0xd3   : > { %v246_v53 = vpop.permute.xlu0 %245 }
  0xd4   : > { %v249_v55 = vsel %vm247_vm11, %v244_v51, %v246_v53 }
  0xd5   : > { %1937 = vmatprep.subr.msk.mxu0 %vm2360_vm5, %v249_v55 }
  0xd6   : > { %1938 = vmatpush1.msk.msra.mxu0 %vm2368_vm6, %v248_v56  ;;  %v628_v10 = vpop.permute.xlu1 %627 }
  0xd7   : > { %1913 = vmatmul.mubr.msk.f32.vlgmr.msra.gmra.mxu0 %vm432_vm12, %v407_v57 }
  0xd8   : > { %767 = vmatprep.mubr.f32.mxu0 %v2167_v5 }
  0xda   : > { %v560_v12 = vpop.permute.xlu1 %559 }
  0xe0   : > { %v430_v58 = vpop.permute.xlu0 %429 }
  0xe4   : > { %v648_v7 = vpop.permute.xlu0 %647 }
  0xe8   : > { %v608_v9 = vpop.permute.xlu0 %607 }
  0xec   : > { %v580_v11 = vpop.permute.xlu0 %579 }
 0x197   : > { %v502_v59 = vpop.f32.mrf.mxu0 }
 0x198   : > { %v503_v60 = vadd.f32 %v502_v59, %v430_v58 }
 0x199   : > { %v504_v63 = vpop.f32.mrf.mxu0 }
 0x19a   : > { %vm507_vm13 = vcmp.gt.f32.partialorder %v503_v60, 0.0  ;;  %v509_v61 = vmul.f32 0.01, %v503_v60  ;;  %v505_v0 = vadd.f32 %v504_v63, %v430_v58 }
 0x19c   : > { %v2405_v62 = vsel %vm507_vm13, %v503_v60, %v509_v61  ;;  %v510_v2 = vmul.f32 0.01, %v505_v0  ;;  %vm508_vm14 = vcmp.gt.f32.partialorder %v505_v0, 0.0  ;;  %v945_v61 = vld [vmem:[%s2958_s2 + $0x10] sm:$0xff] }
 0x19d   : > { %661 = vrot.lane.b32.xlu0 %v2405_v62, %s2161_s19  ;;  %643 = vrot.lane.b32.xlu1 %v2405_v62, %s2162_s20 }
 0x19e   : > { %v2419_v3 = vsel %vm508_vm14, %v505_v0, %v510_v2  ;;  %vm971_vm14 = vcmask 654336  }
 0x1a1   : > { %623 = vrot.lane.b32.xlu0 %v2405_v62, %s2163_s24  ;;  %603 = vrot.lane.b32.xlu1 %v2405_v62, %s2164_s25 }
 0x1a5   : > { %581 = vrot.lane.b32.xlu0 %v2405_v62, %s2165_s26  ;;  %561 = vrot.lane.b32.xlu1 %v2405_v62, %s2166_s27 }
 0x1a9   : > { %663 = vrot.lane.b32.xlu1 %v2419_v3, %s2161_s19  ;;  %543 = vrot.lane.b32.xlu0 %v2405_v62, %s2169_s28 }
 0x1ad   : > { %645 = vrot.lane.b32.xlu1 %v2419_v3, %s2162_s20  ;;  %625 = vrot.lane.b32.xlu0 %v2419_v3, %s2163_s24 }
 0x1b1   : > { %541 = vrot.lane.b32.xlu0 %v2306_v4, %s2169_s28  ;;  %523 = vrot.lane.b32.xlu1 %v2405_v62, %s2170_s29 }
 0x1b5   : > { %563 = vrot.lane.b32.xlu0 %v2419_v3, %s2166_s27  ;;  %605 = vrot.lane.b32.xlu1 %v2419_v3, %s2164_s25 }
 0x1b9   : > { %525 = vrot.lane.b32.xlu0 %v2419_v3, %s2170_s29  ;;  %583 = vrot.lane.b32.xlu1 %v2419_v3, %s2165_s26 }
 0x1bd   : > { %697 = vperm.xlu0 %2063, %v676_v6   ;;  %545 = vrot.lane.b32.xlu1 %v2419_v3, %s2169_s28 }
 0x1c1   : > { %521 = vrot.lane.b32.xlu1 %v2306_v4, %s2170_s29  ;;  %932 = vrot.lane.b32.xlu0 %v2272_v1, %s2161_s19 }
 0x1c5   : > { %914 = vrot.lane.b32.xlu1 %v2272_v1, %s2162_s20  ;;  %894 = vrot.lane.b32.xlu0 %v2272_v1, %s2163_s24 }
 0x1c9   : > { %874 = vrot.lane.b32.xlu1 %v2272_v1, %s2164_s25  ;;  %826 = vrot.lane.b32.xlu0 %v2306_v4, %s2166_s27 }
 0x1cd   : > { %846 = vrot.lane.b32.xlu1 %v2306_v4, %s2165_s26 }
 0x20f   : > { %v662_v13 = vpop.permute.xlu0 %661  ;;  %v644_v14 = vpop.permute.xlu1 %643 }
 0x213   : > { %v624_v15 = vpop.permute.xlu0 %623  ;;  %v604_v16 = vpop.permute.xlu1 %603 }
 0x217   : > { %v582_v18 = vpop.permute.xlu0 %581  ;;  %v562_v20 = vpop.permute.xlu1 %561 }
 0x218   : > { %v585_v41 = vsel %vm312_vm8, %v580_v11, %v582_v18  ;;  %v565_v43 = vsel %vm291_vm9, %v560_v12, %v562_v20 }
 0x21b   : > { %v664_v21 = vpop.permute.xlu1 %663  ;;  %v544_v22 = vpop.permute.xlu0 %543 }
 0x21c   : > { %v667_v23 = vsel %vm398_vm0, %v662_v13, %v664_v21  ;;  %v668_v25 = vsel %vm398_vm0, %v664_v21, %v666_v8 }
 0x21d   : > { %1939 = vmatprep.subr.msk.mxu0 %vm2345_vm1, %v668_v25 }
 0x21e   : > { %1940 = vmatpush1.msk.msra.mxu0 %vm2349_vm2, %v667_v23 }
 0x21f   : > { %v646_v26 = vpop.permute.xlu1 %645  ;;  %v626_v27 = vpop.permute.xlu0 %625 }
 0x220   : > { %v650_v28 = vsel %vm379_vm3, %v646_v26, %v648_v7  ;;  %v649_v30 = vsel %vm379_vm3, %v644_v14, %v646_v26  ;;  %v630_v31 = vsel %vm358_vm4, %v626_v27, %v628_v10  ;;  %v629_v32 = vsel %vm358_vm4, %v624_v15, %v626_v27 }
 0x221   : > { %719 = vmatprep.subr.mxu0 %v650_v28 }
 0x222   : > { %720 = vmatpush1.msra.mxu0 %v649_v30 }
 0x223   : > { %1941 = vmatprep.subr.msk.mxu0 %vm2360_vm5, %v630_v31  ;;  %v542_v33 = vpop.permute.xlu0 %541  ;;  %v524_v34 = vpop.permute.xlu1 %523 }
 0x224   : > { %1942 = vmatpush1.msk.msra.mxu0 %vm2368_vm6, %v629_v32  ;;  %v547_v47 = vsel %vm268_vm10, %v542_v33, %v544_v22 }
 0x227   : > { %v606_v35 = vpop.permute.xlu1 %605  ;;  %v564_v38 = vpop.permute.xlu0 %563 }
 0x228   : > { %v609_v36 = vsel %vm337_vm7, %v604_v16, %v606_v35  ;;  %v610_v37 = vsel %vm337_vm7, %v606_v35, %v608_v9  ;;  %v566_v42 = vsel %vm291_vm9, %v562_v20, %v564_v38 }
 0x229   : > { %1943 = vmatprep.subr.msk.mxu0 %vm2345_vm1, %v610_v37 }
 0x22a   : > { %1944 = vmatpush1.msk.msra.mxu0 %vm2349_vm2, %v609_v36 }
 0x22b   : > { %725 = vmatprep.subr.mxu0 %v2419_v3  ;;  %v584_v39 = vpop.permute.xlu1 %583  ;;  %v526_v44 = vpop.permute.xlu0 %525 }
 0x22c   : > { %v586_v40 = vsel %vm312_vm8, %v582_v18, %v584_v39  ;;  %726 = vmatpush1.msra.mxu0 %v2405_v62  ;;  %v528_v48 = vsel %vm247_vm11, %v524_v34, %v526_v44  ;;  %v944_v44 = vld [vmem:[#allocation4 + $0x20] sm:$0xff] }
 0x22d   : > { %1945 = vmatprep.subr.msk.mxu0 %vm2360_vm5, %v586_v40 }
 0x22e   : > { %1946 = vmatpush1.msk.msra.mxu0 %vm2368_vm6, %v585_v41 }
 0x22f   : > { %1947 = vmatprep.subr.msk.mxu0 %vm2345_vm1, %v566_v42  ;;  %v546_v45 = vpop.permute.xlu1 %545 }
 0x230   : > { %1948 = vmatpush1.msk.msra.mxu0 %vm2349_vm2, %v565_v43  ;;  %v548_v46 = vsel %vm268_vm10, %v544_v22, %v546_v45 }
 0x231   : > { %731 = vmatprep.subr.mxu0 %v548_v46 }
 0x232   : > { %732 = vmatpush1.msra.mxu0 %v547_v47 }
 0x233   : > { %1949 = vmatprep.subr.msk.mxu0 %vm2360_vm5, %v528_v48  ;;  %v522_v49 = vpop.permute.xlu1 %521 }
 0x234   : > { %v527_v51 = vsel %vm247_vm11, %v522_v49, %v524_v34 }
 0x235   : > { %1950 = vmatpush1.msk.msra.mxu0 %vm2368_vm6, %v527_v51  ;;  %v1210_v51 = vld [vmem:[%s2958_s2 + $0x18] sm:$0xff] }
 0x236   : > { %1914 = vmatmul.mubr.msk.f32.vlgmr.msra.gmra.mxu0 %vm432_vm12, %v675_v50  ;;  %987 = vmatprep.subr.mxu0 %v2419_v3  ;;  %v1211_v50 = vld [vmem:[%s2958_s2 + $0x20] sm:$0xff] }
 0x237   : > { %988 = vmatpush1.msra.mxu0 %v2405_v62  ;;  %1039 = vmatprep.mubr.f32.mxu0 %v2167_v5  ;;  %v915_v63 = vpop.permute.xlu1 %914 }
 0x238   : > { %v698_v52 = vpop.permute.xlu0 %697 }
 0x23b   : > { %v875_v2 = vpop.permute.xlu1 %874 }
 0x23c   : > { %v933_v62 = vpop.permute.xlu0 %932 }
 0x23f   : > { %v847_v6 = vpop.permute.xlu1 %846 }
 0x240   : > { %v895_v0 = vpop.permute.xlu0 %894 }
 0x244   : > { %v827_v3 = vpop.permute.xlu0 %826 }
 0x2f6   : > { %v769_v53 = vpop.f32.mrf.mxu0 }
 0x2f7   : > { %v770_v54 = vadd.f32 %v769_v53, %v698_v52  ;;  %v2640_v53 = vld [vmem:[#allocation2 + $0x38] sm:$0xff] }
 0x2f8   : > { %v771_v57 = vpop.f32.mrf.mxu0 }
 0x2f9   : > { %vm774_vm15 = vcmp.gt.f32.partialorder %v770_v54, 0.0  ;;  %v776_v55 = vmul.f32 0.01, %v770_v54  ;;  %v772_v58 = vadd.f32 %v771_v57, %v698_v52  ;;  %v2638_v52 = vld [vmem:[#allocation2 + $0x10] sm:$0xff] }
 0x2fb   : > { %v2506_v56 = vsel %vm774_vm15, %v770_v54, %v776_v55  ;;  %v777_v59 = vmul.f32 0.01, %v772_v58  ;;  %vm775_vm13 = vcmp.gt.f32.partialorder %v772_v58, 0.0 }
 0x2fc   : > { %928 = vrot.lane.b32.xlu1 %v2506_v56, %s2161_s19  ;;  %910 = vrot.lane.b32.xlu0 %v2506_v56, %s2162_s20 }
 0x2fd   : > { %v779_v60 = vsel %vm775_vm13, %v772_v58, %v777_v59 }
 0x300   : > { %890 = vrot.lane.b32.xlu1 %v2506_v56, %s2163_s24  ;;  %870 = vrot.lane.b32.xlu0 %v2506_v56, %s2164_s25 }
 0x304   : > { %848 = vrot.lane.b32.xlu1 %v2506_v56, %s2165_s26  ;;  %828 = vrot.lane.b32.xlu0 %v2506_v56, %s2166_s27 }
 0x308   : > { %912 = vrot.lane.b32.xlu0 %v779_v60, %s2162_s20  ;;  %810 = vrot.lane.b32.xlu1 %v2506_v56, %s2169_s28 }
 0x30c   : > { %930 = vrot.lane.b32.xlu1 %v779_v60, %s2161_s19  ;;  %790 = vrot.lane.b32.xlu0 %v2506_v56, %s2170_s29 }
 0x310   : > { %892 = vrot.lane.b32.xlu1 %v779_v60, %s2163_s24  ;;  %872 = vrot.lane.b32.xlu0 %v779_v60, %s2164_s25 }
 0x314   : > { %808 = vrot.lane.b32.xlu1 %v2306_v4, %s2169_s28  ;;  %850 = vrot.lane.b32.xlu0 %v779_v60, %s2165_s26 }
 0x318   : > { %830 = vrot.lane.b32.xlu1 %v779_v60, %s2166_s27  ;;  %812 = vrot.lane.b32.xlu0 %v779_v60, %s2169_s28 }
 0x31c   : > { %792 = vrot.lane.b32.xlu1 %v779_v60, %s2170_s29  ;;  %788 = vrot.lane.b32.xlu0 %v2306_v4, %s2170_s29 }
 0x320   : > { %968 = vperm.xlu1 %2064, %v945_v61   ;;  %1180 = vrot.lane.b32.xlu0 %v2272_v1, %s2162_s20 }
 0x324   : > { %1198 = vrot.lane.b32.xlu1 %v2272_v1, %s2161_s19  ;;  %1140 = vrot.lane.b32.xlu0 %v2272_v1, %s2164_s25 }
 0x328   : > { %1160 = vrot.lane.b32.xlu1 %v2272_v1, %s2163_s24  ;;  %1112 = vrot.lane.b32.xlu0 %v2306_v4, %s2165_s26 }
 0x32c   : > { %1092 = vrot.lane.b32.xlu1 %v2306_v4, %s2166_s27 }
 0x36e   : > { %v911_v7 = vpop.permute.xlu0 %910  ;;  %v929_v8 = vpop.permute.xlu1 %928 }
 0x372   : > { %v871_v9 = vpop.permute.xlu0 %870  ;;  %v891_v10 = vpop.permute.xlu1 %890 }
 0x376   : > { %v829_v11 = vpop.permute.xlu0 %828  ;;  %v849_v12 = vpop.permute.xlu1 %848 }
 0x377   : > { %v852_v33 = vsel %vm312_vm8, %v847_v6, %v849_v12  ;;  %v832_v37 = vsel %vm291_vm9, %v827_v3, %v829_v11 }
 0x37a   : > { %v913_v13 = vpop.permute.xlu0 %912  ;;  %v811_v1 = vpop.permute.xlu1 %810 }
 0x37b   : > { %v917_v20 = vsel %vm379_vm3, %v913_v13, %v915_v63  ;;  %v916_v21 = vsel %vm379_vm3, %v911_v7, %v913_v13 }
 0x37e   : > { %v791_v14 = vpop.permute.xlu0 %790  ;;  %v931_v15 = vpop.permute.xlu1 %930 }
 0x37f   : > { %v934_v16 = vsel %vm398_vm0, %v929_v8, %v931_v15  ;;  %v935_v18 = vsel %vm398_vm0, %v931_v15, %v933_v62 }
 0x380   : > { %1951 = vmatprep.subr.msk.mxu0 %vm2345_vm1, %v935_v18 }
 0x381   : > { %1952 = vmatpush1.msk.msra.mxu0 %vm2349_vm2, %v934_v16 }
 0x382   : > { %v873_v22 = vpop.permute.xlu0 %872  ;;  %991 = vmatprep.subr.mxu0 %v917_v20  ;;  %v893_v23 = vpop.permute.xlu1 %892 }
 0x383   : > { %v896_v25 = vsel %vm358_vm4, %v891_v10, %v893_v23  ;;  %v897_v26 = vsel %vm358_vm4, %v893_v23, %v895_v0  ;;  %992 = vmatpush1.msra.mxu0 %v916_v21  ;;  %v877_v27 = vsel %vm337_vm7, %v873_v22, %v875_v2  ;;  %v876_v28 = vsel %vm337_vm7, %v871_v9, %v873_v22 }
 0x384   : > { %1953 = vmatprep.subr.msk.mxu0 %vm2360_vm5, %v897_v26 }
 0x385   : > { %1954 = vmatpush1.msk.msra.mxu0 %vm2368_vm6, %v896_v25 }
 0x386   : > { %v851_v30 = vpop.permute.xlu0 %850  ;;  %1955 = vmatprep.subr.msk.mxu0 %vm2345_vm1, %v877_v27  ;;  %v809_v31 = vpop.permute.xlu1 %808 }
 0x387   : > { %1956 = vmatpush1.msk.msra.mxu0 %vm2349_vm2, %v876_v28  ;;  %v853_v32 = vsel %vm312_vm8, %v849_v12, %v851_v30  ;;  %v814_v39 = vsel %vm268_vm10, %v809_v31, %v811_v1 }
 0x388   : > { %997 = vmatprep.subr.mxu0 %v779_v60 }
 0x389   : > { %998 = vmatpush1.msra.mxu0 %v2506_v56 }
 0x38a   : > { %v813_v34 = vpop.permute.xlu0 %812  ;;  %1957 = vmatprep.subr.msk.mxu0 %vm2360_vm5, %v853_v32  ;;  %v831_v35 = vpop.permute.xlu1 %830 }
 0x38b   : > { %v833_v36 = vsel %vm291_vm9, %v829_v11, %v831_v35  ;;  %1958 = vmatpush1.msk.msra.mxu0 %vm2368_vm6, %v852_v33  ;;  %v815_v38 = vsel %vm268_vm10, %v811_v1, %v813_v34  ;;  %v1208_v35 = vld [vmem:[#allocation4 + $0x30] sm:$0xff] }
 0x38c   : > { %1959 = vmatprep.subr.msk.mxu0 %vm2345_vm1, %v833_v36  ;;  %v1209_v36 = vld [vmem:[#allocation4 + $0x40] sm:$0xff] }
 0x38d   : > { %1960 = vmatpush1.msk.msra.mxu0 %vm2349_vm2, %v832_v37  ;;  %v1458_v37 = vld [vmem:[#allocation2 + $0x8] sm:$0xff] }
 0x38e   : > { %v789_v40 = vpop.permute.xlu0 %788  ;;  %1003 = vmatprep.subr.mxu0 %v815_v38  ;;  %v793_v41 = vpop.permute.xlu1 %792  ;;  %v1455_v38 = vld [vmem:[#allocation2 + $0x30] sm:$0xff] }
 0x38f   : > { %v794_v42 = vsel %vm247_vm11, %v789_v40, %v791_v14  ;;  %v795_v43 = vsel %vm247_vm11, %v791_v14, %v793_v41  ;;  %1004 = vmatpush1.msra.mxu0 %v814_v39 }
 0x390   : > { %1961 = vmatprep.subr.msk.mxu0 %vm2360_vm5, %v795_v43 }
 0x391   : > { %1962 = vmatpush1.msk.msra.mxu0 %vm2368_vm6, %v794_v42 }
 0x392   : > { %1915 = vmatmul.mubr.msk.f32.vlgmr.msra.gmra.mxu0 %vm971_vm14, %v944_v44 }
 0x39b   : > { %v969_v45 = vpop.permute.xlu1 %968 }
 0x39f   : > { %v1199_v54 = vpop.permute.xlu1 %1198 }
 0x3a3   : > { %v1161_v56 = vpop.permute.xlu1 %1160 }
 0x3a7   : > { %v1093_v58 = vpop.permute.xlu1 %1092 }
 0x452   : > { %v1041_v46 = vpop.f32.mrf.mxu0 }
 0x453   : > { %v2592_v47 = vadd.f32 %v1041_v46, %v969_v45 }
 0x454   : > { %v1043_v48 = vpop.f32.mrf.mxu0 }
 0x455   : > { %1194 = vrot.lane.b32.xlu0 %v2592_v47, %s2161_s19  ;;  %1176 = vrot.lane.b32.xlu1 %v2592_v47, %s2162_s20  ;;  %v2606_v49 = vadd.f32 %v1043_v48, %v969_v45 }
 0x459   : > { %1156 = vrot.lane.b32.xlu0 %v2592_v47, %s2163_s24  ;;  %1136 = vrot.lane.b32.xlu1 %v2592_v47, %s2164_s25 }
 0x45d   : > { %1114 = vrot.lane.b32.xlu0 %v2592_v47, %s2165_s26  ;;  %1094 = vrot.lane.b32.xlu1 %v2592_v47, %s2166_s27 }
 0x461   : > { %1178 = vrot.lane.b32.xlu1 %v2606_v49, %s2162_s20  ;;  %1076 = vrot.lane.b32.xlu0 %v2592_v47, %s2169_s28 }
 0x465   : > { %1196 = vrot.lane.b32.xlu0 %v2606_v49, %s2161_s19  ;;  %1056 = vrot.lane.b32.xlu1 %v2592_v47, %s2170_s29 }
 0x469   : > { %1158 = vrot.lane.b32.xlu0 %v2606_v49, %s2163_s24  ;;  %1138 = vrot.lane.b32.xlu1 %v2606_v49, %s2164_s25 }
 0x46d   : > { %1074 = vrot.lane.b32.xlu0 %v2306_v4, %s2169_s28  ;;  %1116 = vrot.lane.b32.xlu1 %v2606_v49, %s2165_s26 }
 0x471   : > { %1096 = vrot.lane.b32.xlu0 %v2606_v49, %s2166_s27  ;;  %1078 = vrot.lane.b32.xlu1 %v2606_v49, %s2169_s28 }
 0x475   : > { %1058 = vrot.lane.b32.xlu0 %v2606_v49, %s2170_s29  ;;  %1054 = vrot.lane.b32.xlu1 %v2306_v4, %s2170_s29  ;;  %v1181_v4 = vpop.permute.xlu0 %1180 }
 0x479   : > { %1237 = vperm.xlu0 %2063, %v1211_v50   ;;  %1232 = vperm.xlu1 %2064, %v1210_v51   ;;  %v1141_v55 = vpop.permute.xlu0 %1140 }
 0x47d   : > { %1599 = vrot.lane.b32.xlu0 %v2638_v52, %s2162_s20  ;;  %1605 = vrot.lane.b32.xlu1 %v2640_v53, %s2162_s20  ;;  %v1113_v57 = vpop.permute.xlu0 %1112 }
 0x481   : > { %1559 = vrot.lane.b32.xlu0 %v2638_v52, %s2163_s24  ;;  %1565 = vrot.lane.b32.xlu1 %v2640_v53, %s2163_s24 }
 0x485   : > { %1519 = vrot.lane.b32.xlu0 %v2638_v52, %s2164_s25  ;;  %1525 = vrot.lane.b32.xlu1 %v2640_v53, %s2164_s25 }
 0x489   : > { %1473 = vrot.lane.b32.xlu0 %v1458_v37, %s2165_s26  ;;  %1467 = vrot.lane.b32.xlu1 %v1455_v38, %s2165_s26 }
 0x48d   : > { %1433 = vrot.lane.b32.xlu0 %v1458_v37, %s2166_s27  ;;  %1427 = vrot.lane.b32.xlu1 %v1455_v38, %s2166_s27 }
 0x491   : > { %1397 = vrot.lane.b32.xlu0 %v1458_v37, %s2169_s28 }
 0x4c7   : > { %v1195_v59 = vpop.permute.xlu0 %1194  ;;  %v1177_v60 = vpop.permute.xlu1 %1176 }
 0x4cb   : > { %v1157_v61 = vpop.permute.xlu0 %1156  ;;  %v1137_v62 = vpop.permute.xlu1 %1136 }
 0x4cf   : > { %v1115_v63 = vpop.permute.xlu0 %1114  ;;  %v1095_v0 = vpop.permute.xlu1 %1094 }
 0x4d0   : > { %v1118_v22 = vsel %vm312_vm8, %v1113_v57, %v1115_v63  ;;  %v1098_v27 = vsel %vm291_vm9, %v1093_v58, %v1095_v0 }
 0x4d3   : > { %v1077_v2 = vpop.permute.xlu0 %1076  ;;  %v1179_v3 = vpop.permute.xlu1 %1178 }
 0x4d4   : > { %v1183_v10 = vsel %vm379_vm3, %v1179_v3, %v1181_v4  ;;  %v1182_v13 = vsel %vm379_vm3, %v1177_v60, %v1179_v3  ;;  %v1665_v60 = vld [vmem:[%s2958_s2 + $0x28] sm:$0xff] }
 0x4d7   : > { %v1197_v6 = vpop.permute.xlu0 %1196  ;;  %v1057_v7 = vpop.permute.xlu1 %1056 }
 0x4d8   : > { %v1201_v8 = vsel %vm398_vm0, %v1197_v6, %v1199_v54  ;;  %v1200_v9 = vsel %vm398_vm0, %v1195_v59, %v1197_v6  ;;  %v1662_v59 = vld [vmem:[#allocation4 + $0x58] sm:$0xff] }
 0x4d9   : > { %1963 = vmatprep.subr.msk.mxu1 %vm2345_vm1, %v1201_v8 }
 0x4da   : > { %1964 = vmatpush1.msk.msra.mxu1 %vm2349_vm2, %v1200_v9 }
 0x4db   : > { %v1159_v11 = vpop.permute.xlu0 %1158  ;;  %1262 = vmatprep.subr.mxu1 %v1183_v10  ;;  %v1139_v12 = vpop.permute.xlu1 %1138 }
 0x4dc   : > { %v1162_v1 = vsel %vm358_vm4, %v1157_v61, %v1159_v11  ;;  %v1163_v14 = vsel %vm358_vm4, %v1159_v11, %v1161_v56  ;;  %1263 = vmatpush1.msra.mxu1 %v1182_v13  ;;  %v1143_v15 = vsel %vm337_vm7, %v1139_v12, %v1141_v55  ;;  %v1142_v16 = vsel %vm337_vm7, %v1137_v62, %v1139_v12 }
 0x4dd   : > { %1965 = vmatprep.subr.msk.mxu1 %vm2360_vm5, %v1163_v14 }
 0x4de   : > { %1966 = vmatpush1.msk.msra.mxu1 %vm2368_vm6, %v1162_v1 }
 0x4df   : > { %v1075_v18 = vpop.permute.xlu0 %1074  ;;  %1967 = vmatprep.subr.msk.mxu1 %vm2345_vm1, %v1143_v15  ;;  %v1117_v20 = vpop.permute.xlu1 %1116 }
 0x4e0   : > { %1968 = vmatpush1.msk.msra.mxu1 %vm2349_vm2, %v1142_v16  ;;  %v1119_v21 = vsel %vm312_vm8, %v1115_v63, %v1117_v20  ;;  %v1080_v32 = vsel %vm268_vm10, %v1075_v18, %v1077_v2 }
 0x4e1   : > { %1268 = vmatprep.subr.mxu1 %v2606_v49 }
 0x4e2   : > { %1269 = vmatpush1.msra.mxu1 %v2592_v47 }
 0x4e3   : > { %v1097_v23 = vpop.permute.xlu0 %1096  ;;  %1969 = vmatprep.subr.msk.mxu1 %vm2360_vm5, %v1119_v21  ;;  %v1079_v25 = vpop.permute.xlu1 %1078 }
 0x4e4   : > { %v1099_v26 = vsel %vm291_vm9, %v1095_v0, %v1097_v23  ;;  %1970 = vmatpush1.msk.msra.mxu1 %vm2368_vm6, %v1118_v22  ;;  %v1081_v28 = vsel %vm268_vm10, %v1077_v2, %v1079_v25 }
 0x4e5   : > { %1971 = vmatprep.subr.msk.mxu1 %vm2345_vm1, %v1099_v26 }
 0x4e6   : > { %1972 = vmatpush1.msk.msra.mxu1 %vm2349_vm2, %v1098_v27 }
 0x4e7   : > { %v1059_v30 = vpop.permute.xlu0 %1058  ;;  %1274 = vmatprep.subr.mxu1 %v1081_v28  ;;  %v1055_v31 = vpop.permute.xlu1 %1054 }
 0x4e8   : > { %v1061_v33 = vsel %vm247_vm11, %v1057_v7, %v1059_v30  ;;  %v1060_v34 = vsel %vm247_vm11, %v1055_v31, %v1057_v7  ;;  %1275 = vmatpush1.msra.mxu1 %v1080_v32 }
 0x4e9   : > { %1973 = vmatprep.subr.msk.mxu1 %vm2360_vm5, %v1061_v33 }
 0x4ea   : > { %1974 = vmatpush1.msk.msra.mxu1 %vm2368_vm6, %v1060_v34 }
 0x4eb   : > { %1916 = vmatmul.mubr.msk.f32.vlgmr.msra.gmra.mxu1 %vm432_vm12, %v1208_v35 }
 0x4ec   : > { %1316 = vmatprep.mubr.f32.mxu1 %v2167_v5 }
 0x4ef   : > { %1917 = vmatmul.mubr.msk.f32.gmra.mxu1 %vm432_vm12, %v1209_v36 }
 0x4f4   : > { %v1233_v39 = vpop.permute.xlu1 %1232  ;;  %v1238_v44 = vpop.permute.xlu0 %1237 }
 0x4f8   : > { %v1600_v61 = vpop.permute.xlu0 %1599  ;;  %v1606_v62 = vpop.permute.xlu1 %1605 }
 0x4fc   : > { %v1560_v63 = vpop.permute.xlu0 %1559  ;;  %v1566_v0 = vpop.permute.xlu1 %1565 }
 0x500   : > { %v1520_v2 = vpop.permute.xlu0 %1519  ;;  %v1526_v3 = vpop.permute.xlu1 %1525 }
 0x504   : > { %v2790_v6 = vpop.permute.xlu1 %1467 }
 0x508   : > { %v2794_v8 = vpop.permute.xlu1 %1427 }
 0x5ab   : > { %v1312_v40 = vpop.f32.mrf.mxu1 }
 0x5ac   : > { %v1313_v41 = vadd.f32 %v1312_v40, %v1233_v39 }
 0x5ad   : > { %v1314_v42 = vpop.f32.mrf.mxu1 }
 0x5ae   : > { %vm1323_vm15 = vcmp.gt.f32.partialorder %v1313_v41, 0.0  ;;  %v1327_v5 = vmul.f32 0.01, %v1313_v41  ;;  %v1315_v43 = vadd.f32 %v1314_v42, %v1233_v39 }
 0x5af   : > { %v1318_v45 = vpop.f32.mrf.mxu1 }
 0x5b0   : > { %v2704_v46 = vsel %vm1323_vm15, %v1313_v41, %v1327_v5  ;;  %vm1324_vm12 = vcmp.gt.f32.partialorder %v1315_v43, 0.0  ;;  %v1328_v48 = vmul.f32 0.01, %v1315_v43  ;;  %v1319_v50 = vadd.f32 %v1318_v45, %v1238_v44 }
 0x5b1   : > { %v1320_v51 = vpop.f32.mrf.mxu1  ;;  %1595 = vrot.lane.b32.xlu1 %v2704_v46, %s2162_s20  ;;  %vm1715_vm15 = vcmask 195584  }
 0x5b2   : > { %v2708_v4 = vsel %vm1324_vm12, %v1315_v43, %v1328_v48  ;;  %vm1325_vm13 = vcmp.gt.f32.partialorder %v1319_v50, 0.0  ;;  %v1329_v54 = vmul.f32 0.01, %v1319_v50  ;;  %v1321_v55 = vadd.f32 %v1320_v51, %v1238_v44  ;;  %1918 = vmatprep.mubr.msk.f32.mxu1 %vm1715_vm15, %v1662_v59 }
 0x5b3   : > { %1471 = vrot.lane.b32.xlu0 %v2708_v4, %s2165_s26 }
 0x5b4   : > { %v2712_v56 = vsel %vm1325_vm13, %v1319_v50, %v1329_v54  ;;  %vm1326_vm14 = vcmp.gt.f32.partialorder %v1321_v55, 0.0  ;;  %v1330_v57 = vmul.f32 0.01, %v1321_v55 }
 0x5b5   : > { %1555 = vrot.lane.b32.xlu1 %v2704_v46, %s2163_s24 }
 0x5b6   : > { %v2716_v58 = vsel %vm1326_vm14, %v1321_v55, %v1330_v57 }
 0x5b7   : > { %1431 = vrot.lane.b32.xlu0 %v2708_v4, %s2166_s27 }
 0x5b9   : > { %1515 = vrot.lane.b32.xlu1 %v2704_v46, %s2164_s25 }
 0x5bb   : > { %1601 = vrot.lane.b32.xlu0 %v2712_v56, %s2162_s20 }
 0x5bd   : > { %1469 = vrot.lane.b32.xlu1 %v2704_v46, %s2165_s26 }
 0x5bf   : > { %1561 = vrot.lane.b32.xlu0 %v2712_v56, %s2163_s24 }
 0x5c1   : > { %1429 = vrot.lane.b32.xlu1 %v2704_v46, %s2166_s27 }
 0x5c3   : > { %1521 = vrot.lane.b32.xlu0 %v2712_v56, %s2164_s25 }
 0x5c5   : > { %1393 = vrot.lane.b32.xlu1 %v2704_v46, %s2169_s28 }
 0x5c7   : > { %1475 = vrot.lane.b32.xlu0 %v2712_v56, %s2165_s26 }
 0x5c9   : > { %1597 = vrot.lane.b32.xlu1 %v2708_v4, %s2162_s20 }
 0x5cb   : > { %1435 = vrot.lane.b32.xlu0 %v2712_v56, %s2166_s27 }
 0x5cd   : > { %1557 = vrot.lane.b32.xlu1 %v2708_v4, %s2163_s24 }
 0x5cf   : > { %1399 = vrot.lane.b32.xlu0 %v2712_v56, %s2169_s28 }
 0x5d1   : > { %1517 = vrot.lane.b32.xlu1 %v2708_v4, %s2164_s25 }
 0x5d3   : > { %1603 = vrot.lane.b32.xlu0 %v2716_v58, %s2162_s20 }
 0x5d5   : > { %1391 = vrot.lane.b32.xlu1 %v1455_v38, %s2169_s28 }
 0x5d7   : > { %1563 = vrot.lane.b32.xlu0 %v2716_v58, %s2163_s24 }
 0x5d9   : > { %1353 = vrot.lane.b32.xlu1 %v2704_v46, %s2170_s29 }
 0x5db   : > { %1523 = vrot.lane.b32.xlu0 %v2716_v58, %s2164_s25 }
 0x5dd   : > { %1351 = vrot.lane.b32.xlu1 %v1455_v38, %s2170_s29 }
 0x5df   : > { %1395 = vrot.lane.b32.xlu0 %v2708_v4, %s2169_s28 }
 0x5e1   : > { %1477 = vrot.lane.b32.xlu1 %v2716_v58, %s2165_s26 }
 0x5e3   : > { %1359 = vrot.lane.b32.xlu0 %v2712_v56, %s2170_s29 }
 0x5e5   : > { %1437 = vrot.lane.b32.xlu1 %v2716_v58, %s2166_s27  ;;  %s1829_s27 = sshll.u32 %s2268_s17, 4  ;;  %s2910_s27 = int_to_ptr.vmem [resolvable:$true] %s1829_s27 }
 0x5e6   : > { %s2091_s8 = scalar_lea.vmem %s2910_s27, 512  ;;  %p2098_p12 = scmp.lt.s32.totalorder %s2910_s27, %s2096_s10 }
 0x5e7   : > { %1357 = vrot.lane.b32.xlu0 %v1458_v37, %s2170_s29  ;;  %p2092_p9 = scmp.ne.s32.totalorder %s2910_s27, %s2091_s8  ;;  %p2099_p13 = scmp.lt.s32.totalorder %s2097_s11, %s2091_s8 }
 0x5e9   : > { %1401 = vrot.lane.b32.xlu1 %v2716_v58, %s2169_s28  ;;  %p2093_p10 = pnand %p2092_p9, %p2231_p5  ;;  %p2100_p0 = por %p2099_p13, %p2098_p12 }
 0x5eb   : > { %1355 = vrot.lane.b32.xlu0 %v2708_v4, %s2170_s29  ;;  %p2094_p11 = pneg %p2093_p10 }
 0x5ed   : > { %1361 = vrot.lane.b32.xlu1 %v2716_v58, %s2170_s29  ;;  %p2101_p1 = pnand %p2100_p0, %p2094_p11 }
 0x5ef   : > { %1637 = vrot.lane.b32.xlu0 %v2712_v56, %s2161_s19 }
 0x5f1   : > { %1641 = vrot.lane.b32.xlu1 %v2640_v53, %s2161_s19  ;;  %v1666_v53 = vld [vmem:[%s2958_s2 + $0x30] sm:$0xff] }
 0x5f3   : > { %1639 = vrot.lane.b32.xlu0 %v2716_v58, %s2161_s19 }
 0x5f5   : > { %1633 = vrot.lane.b32.xlu1 %v2708_v4, %s2161_s19 }
 0x5f7   : > { %1635 = vrot.lane.b32.xlu0 %v2638_v52, %s2161_s19  ;;  %v1474_v52 = vpop.permute.xlu0 %1473 }
 0x5f9   : > { %1631 = vrot.lane.b32.xlu1 %v2704_v46, %s2161_s19  ;;  %s1926_s19 = sshll.u32 %s2214_s16, 9  ;;  %s2915_s16 = scalar_lea.sflag [#allocation6], %s176_s5 }
 0x5fa   : > { %s2907_s7 = scalar_lea.hbm %s2959_s3, %s1926_s19 }
 0x5fb   : > { %1707 = vperm.xlu0 %2063, %v1665_v60   ;;  %v2792_v7 = vpop.permute.xlu0 %1433 }
 0x5fd   : > { %1712 = vperm.xlu1 %2064, %v1666_v53  }
 0x5ff   : > { %v2796_v9 = vpop.permute.xlu0 %1397 }
 0x623   : > { %v1596_v10 = vpop.permute.xlu1 %1595 }
 0x625   : > { %v1472_v11 = vpop.permute.xlu0 %1471 }
 0x627   : > { %v1556_v12 = vpop.permute.xlu1 %1555 }
 0x629   : > { %v2798_v13 = vpop.permute.xlu0 %1431 }
 0x62b   : > { %v1516_v1 = vpop.permute.xlu1 %1515 }
 0x62d   : > { %v1602_v14 = vpop.permute.xlu0 %1601 }
 0x62f   : > { %v1470_v15 = vpop.permute.xlu1 %1469 }
 0x630   : > { %v1480_v60 = vsel %vm312_vm8, %v1470_v15, %v1472_v11 }
 0x631   : > { %v1562_v16 = vpop.permute.xlu0 %1561 }
 0x633   : > { %v2800_v18 = vpop.permute.xlu1 %1429 }
 0x635   : > { %v1522_v20 = vpop.permute.xlu0 %1521 }
 0x637   : > { %v2802_v21 = vpop.permute.xlu1 %1393 }
 0x639   : > { %v1476_v22 = vpop.permute.xlu0 %1475 }
 0x63a   : > { %v1481_v57 = vsel %vm312_vm8, %v1474_v52, %v1476_v22 }
 0x63b   : > { %v1598_v23 = vpop.permute.xlu1 %1597 }
 0x63c   : > { %v1608_v34 = vsel %vm379_vm3, %v1598_v23, %v1600_v61  ;;  %v1607_v35 = vsel %vm379_vm3, %v1596_v10, %v1598_v23  ;;  %v1440_v61 = vsel %vm291_vm9, %v2800_v18, %v2798_v13 }
 0x63d   : > { %v1436_v25 = vpop.permute.xlu0 %1435 }
 0x63f   : > { %v1558_v26 = vpop.permute.xlu1 %1557 }
 0x640   : > { %v1568_v40 = vsel %vm358_vm4, %v1558_v26, %v1560_v63  ;;  %v1567_v41 = vsel %vm358_vm4, %v1556_v12, %v1558_v26 }
 0x641   : > { %v1400_v27 = vpop.permute.xlu0 %1399 }
 0x643   : > { %v1518_v28 = vpop.permute.xlu1 %1517 }
 0x644   : > { %v1528_v45 = vsel %vm337_vm7, %v1518_v28, %v1520_v2  ;;  %v1527_v48 = vsel %vm337_vm7, %v1516_v1, %v1518_v28  ;;  %v1405_v2 = vsel %vm268_vm10, %v2796_v9, %v1400_v27 }
 0x645   : > { %v1604_v30 = vpop.permute.xlu0 %1603 }
 0x646   : > { %v1609_v31 = vsel %vm379_vm3, %v1602_v14, %v1604_v30  ;;  %v1610_v32 = vsel %vm379_vm3, %v1604_v30, %v1606_v62  ;;  %v1439_v62 = vsel %vm291_vm9, %v2794_v8, %v2800_v18 }
 0x647   : > { %1722 = vmatprep.subr.mxu1 %v1610_v32  ;;  %v1392_v33 = vpop.permute.xlu1 %1391 }
 0x648   : > { %1723 = vmatpush1.msra.mxu1 %v1609_v31 }
 0x649   : > { %v1564_v36 = vpop.permute.xlu0 %1563  ;;  %1724 = vmatprep.subr.mxu1 %v1608_v34 }
 0x64a   : > { %v1569_v37 = vsel %vm358_vm4, %v1562_v16, %v1564_v36  ;;  %v1570_v38 = vsel %vm358_vm4, %v1564_v36, %v1566_v0  ;;  %1725 = vmatpush1.msra.mxu1 %v1607_v35 }
 0x64b   : > { %1975 = vmatprep.subr.msk.mxu1 %vm2360_vm5, %v1570_v38  ;;  %v1354_v39 = vpop.permute.xlu1 %1353 }
 0x64c   : > { %1976 = vmatpush1.msk.msra.mxu1 %vm2368_vm6, %v1569_v37 }
 0x64d   : > { %v1524_v42 = vpop.permute.xlu0 %1523  ;;  %1977 = vmatprep.subr.msk.mxu1 %vm2360_vm5, %v1568_v40 }
 0x64e   : > { %v1529_v5 = vsel %vm337_vm7, %v1522_v20, %v1524_v42  ;;  %v1530_v43 = vsel %vm337_vm7, %v1524_v42, %v1526_v3  ;;  %1978 = vmatpush1.msk.msra.mxu1 %vm2368_vm6, %v1567_v41  ;;  %v1664_v20 = vld [vmem:[#allocation4 + $0x68] sm:$0xff] }
 0x64f   : > { %1979 = vmatprep.subr.msk.mxu1 %vm2345_vm1, %v1530_v43  ;;  %v1352_v44 = vpop.permute.xlu1 %1351 }
 0x650   : > { %1980 = vmatpush1.msk.msra.mxu1 %vm2349_vm2, %v1529_v5  ;;  %v1363_v12 = vsel %vm247_vm11, %v1352_v44, %v1354_v39 }
 0x651   : > { %v1396_v50 = vpop.permute.xlu0 %1395  ;;  %1981 = vmatprep.subr.msk.mxu1 %vm2345_vm1, %v1528_v45 }
 0x652   : > { %1982 = vmatpush1.msk.msra.mxu1 %vm2349_vm2, %v1527_v48  ;;  %v1404_v52 = vsel %vm268_vm10, %v2802_v21, %v1396_v50 }
 0x653   : > { %1734 = vmatprep.subr.mxu1 %v2716_v58  ;;  %v1478_v51 = vpop.permute.xlu1 %1477 }
 0x654   : > { %1735 = vmatpush1.msra.mxu1 %v2712_v56  ;;  %v1482_v55 = vsel %vm312_vm8, %v1476_v22, %v1478_v51  ;;  %v1479_v56 = vsel %vm312_vm8, %v2790_v6, %v1470_v15  ;;  %v1403_v6 = vsel %vm268_vm10, %v1392_v33, %v2802_v21 }
 0x655   : > { %v1360_v54 = vpop.permute.xlu0 %1359  ;;  %1736 = vmatprep.subr.mxu1 %v2708_v4  ;;  %v1441_v4 = vsel %vm291_vm9, %v2792_v7, %v1436_v25 }
 0x656   : > { %1737 = vmatpush1.msra.mxu1 %v2704_v46 }
 0x657   : > { %1983 = vmatprep.subr.msk.mxu1 %vm2360_vm5, %v1482_v55  ;;  %v1438_v59 = vpop.permute.xlu1 %1437 }
 0x658   : > { %1984 = vmatpush1.msk.msra.mxu1 %vm2368_vm6, %v1481_v57  ;;  %v1442_v46 = vsel %vm291_vm9, %v1436_v25, %v1438_v59 }
 0x659   : > { %v1358_v58 = vpop.permute.xlu0 %1357  ;;  %1985 = vmatprep.subr.msk.mxu1 %vm2360_vm5, %v1480_v60 }
 0x65a   : > { %1986 = vmatpush1.msk.msra.mxu1 %vm2368_vm6, %v1479_v56  ;;  %v1365_v10 = vsel %vm247_vm11, %v1358_v58, %v1360_v54 }
 0x65b   : > { %1987 = vmatprep.subr.msk.mxu1 %vm2345_vm1, %v1442_v46  ;;  %v1402_v53 = vpop.permute.xlu1 %1401 }
 0x65c   : > { %1988 = vmatpush1.msk.msra.mxu1 %vm2349_vm2, %v1441_v4  ;;  %v1406_v0 = vsel %vm268_vm10, %v1400_v27, %v1402_v53 }
 0x65d   : > { %v1356_v63 = vpop.permute.xlu0 %1355  ;;  %1989 = vmatprep.subr.msk.mxu1 %vm2345_vm1, %v1440_v61 }
 0x65e   : > { %1990 = vmatpush1.msk.msra.mxu1 %vm2349_vm2, %v1439_v62  ;;  %v1364_v11 = vsel %vm247_vm11, %v1354_v39, %v1356_v63 }
 0x65f   : > { %1746 = vmatprep.subr.mxu1 %v1406_v0  ;;  %v1362_v3 = vpop.permute.xlu1 %1361 }
 0x660   : > { %1747 = vmatpush1.msra.mxu1 %v1405_v2  ;;  %v1366_v8 = vsel %vm247_vm11, %v1360_v54, %v1362_v3 }
 0x661   : > { %v1638_v7 = vpop.permute.xlu0 %1637  ;;  %1748 = vmatprep.subr.mxu1 %v1404_v52 }
 0x662   : > { %1749 = vmatpush1.msra.mxu1 %v1403_v6 }
 0x663   : > { %1991 = vmatprep.subr.msk.mxu1 %vm2360_vm5, %v1366_v8  ;;  %v1642_v9 = vpop.permute.xlu1 %1641 }
 0x664   : > { %1992 = vmatpush1.msk.msra.mxu1 %vm2368_vm6, %v1365_v10 }
 0x665   : > { %v1640_v13 = vpop.permute.xlu0 %1639  ;;  %1993 = vmatprep.subr.msk.mxu1 %vm2360_vm5, %v1364_v11 }
 0x666   : > { %1994 = vmatpush1.msk.msra.mxu1 %vm2368_vm6, %v1363_v12  ;;  %v1646_v14 = vsel %vm398_vm0, %v1640_v13, %v1642_v9  ;;  %v1645_v15 = vsel %vm398_vm0, %v1638_v7, %v1640_v13 }
 0x667   : > { %1780 = vmatprep.subr.mxu1 %v2606_v49  ;;  %v1634_v1 = vpop.permute.xlu1 %1633 }
 0x668   : > { %1781 = vmatpush2.msra.mxu1 %v2592_v47  ;;  %v1663_v47 = vld [vmem:[#allocation4 + $0x60] sm:$0xff] }
 0x669   : > { %v1636_v16 = vpop.permute.xlu0 %1635  ;;  %1995 = vmatprep.subr.msk.mxu1 %vm2345_vm1, %v1646_v14 }
 0x66a   : > { %v1644_v18 = vsel %vm398_vm0, %v1634_v1, %v1636_v16  ;;  %1996 = vmatpush2.msk.msra.mxu1 %vm2349_vm2, %v1645_v15 }
 0x66b   : > { %1997 = vmatprep.subr.msk.mxu1 %vm2345_vm1, %v1644_v18  ;;  %v1632_v24 = vpop.permute.xlu1 %1631 }
 0x66c   : > { %v1643_v49 = vsel %vm398_vm0, %v1632_v24, %v1634_v1 }
 0x66d   : > { %1998 = vmatpush2.msk.msra.mxu1 %vm2349_vm2, %v1643_v49 }
 0x66e   : > { %1787 = vmatmul.mubr.f32.vlgmr.msra.gmra.mxu1 %v1661_v29 }
 0x66f   : > { %1919 = vmatprep.mubr.msk.f32.mxu1 %vm1715_vm15, %v1664_v20 }
 0x672   : > { %1793 = vmatmul.mubr.f32.gmra.mxu1 %v1663_v47 }
 0x676   : > { %v1708_v21 = vpop.permute.xlu0 %1707 }
 0x678   : > { %v1713_v27 = vpop.permute.xlu1 %1712 }
 0x72e   : > { %v1788_v22 = vpop.f32.mrf.mxu1 }
 0x72f   : > { %v1789_v23 = vadd.f32 %v1788_v22, %v1708_v21 }
 0x730   : > { %v1790_v17 = vpop.f32.mrf.mxu1 }
 0x731   : > { %vm1799_vm1 = vcmp.gt.f32.partialorder %v1789_v23, 0.0  ;;  %v1803_v25 = vmul.f32 0.01, %v1789_v23  ;;  %v1791_v26 = vadd.f32 %v1790_v17, %v1708_v21 }
 0x732   : > { %v1794_v28 = vpop.f32.mrf.mxu1 }
 0x733   : > { %v1807_v19 = vsel %vm1799_vm1, %v1789_v23, %v1803_v25  ;;  %vm1800_vm0 = vcmp.gt.f32.partialorder %v1791_v26, 0.0  ;;  %v1804_v30 = vmul.f32 0.01, %v1791_v26  ;;  %v1795_v31 = vadd.f32 %v1794_v28, %v1713_v27 }
 0x734   : > { %1811 = vst [vmem:[%s2268_s17] sm:$0xff] %v1807_v19  ;;  %v1796_v32 = vpop.f32.mrf.mxu1 }
 0x735   : > { %v1808_v33 = vsel %vm1800_vm0, %v1791_v26, %v1804_v30  ;;  %vm1801_vm2 = vcmp.gt.f32.partialorder %v1795_v31, 0.0  ;;  %v1805_v34 = vmul.f32 0.01, %v1795_v31  ;;  %v1797_v35 = vadd.f32 %v1796_v32, %v1713_v27 }
 0x736   : > { %1812 = vst [vmem:[%s2268_s17 + $0x8] sm:$0xff] %v1808_v33 }
 0x737   : > { %v1809_v36 = vsel %vm1801_vm2, %v1795_v31, %v1805_v34  ;;  %vm1802_vm3 = vcmp.gt.f32.partialorder %v1797_v35, 0.0  ;;  %v1806_v37 = vmul.f32 0.01, %v1797_v35 }
 0x738   : > { %1813 = vst [vmem:[%s2268_s17 + $0x10] sm:$0xff] %v1809_v36 }
 0x739   : > { %v1810_v38 = vsel %vm1802_vm3, %v1797_v35, %v1806_v37 }
 0x73a   : > { %1814 = vst [vmem:[%s2268_s17 + $0x18] sm:$0xff] %v1810_v38 }
 0x73b   : > { %2104 = shalt.err (!%p2101_p1)
}
 0x73c   : > { %s2105_s5 = scalar_lea.hbm %s2907_s7, 512  ;;  %s2109_s4 = scalar_lea.hbm %s2959_s3, 1024 }
 0x73d   : > { %p2106_p2 = scmp.ne.s32.totalorder %s2907_s7, %s2105_s5  ;;  %p2110_p7 = scmp.lt.s32.totalorder %s2907_s7, %s2959_s3 }
 0x73e   : > { %p2111_p6 = scmp.lt.s32.totalorder %s2109_s4, %s2105_s5 }
 0x73f   : > { %p2107_p3 = pnand %p2106_p2, %p2231_p5 }
 0x740   : > { %p2112_p8 = por %p2111_p6, %p2110_p7 }
 0x741   : > { %p2108_p4 = pneg %p2107_p3 }
 0x743   : > { %p2113_p9 = pnand %p2112_p8, %p2108_p4 }
 0x745   : > { %2116 = shalt.err (!%p2113_p9)
}
 0x746   : > { %s2172_s25 = smov 256  }
 0x747   : > { %2003 = dma.vmem_to_hbm [thread:$0]  (%p2231_p5), %s2910_s27, 512, %s2907_s7, %s2915_s16, %s2172_s25, %s2172_s25, %s2169_s28  }
 0x748 PF: > { %p2015_p10 = scmp.ge.s32.totalorder %s2155_s15, 2  ;;  %s1844_s26 = sand.u32 1, %s2143_s12  }
 0x749   : > { %p2972_p11 = scmp.ne.s32.totalorder %s2961_s23, 0  ;;  %s1845_s19 = scalar_lea.sflag [#allocation6], %s1844_s26 }
 0x74b   : > { %p2010_p12 = pnand %p2015_p10, %p2972_p11 }
 0x74d   : > { %p2011_p13 = pneg %p2010_p12 }
 0x74f   : > { %2138 = dma.done.wait (%p2011_p13), %s1845_s19, 512  }
 0x750   : > { %2140 = vsyncadd (%p2011_p13), %s1845_s19, 4294966784  ;;  %p14_p0 = scmp.ge.s32.totalorder %s2218_s18, 4   ;;  %s2973_s12 = smov %s2147_s13 }
 0x751   : > { %s2974_s13 = smov %s2151_s14  ;;  %s2975_s14 = smov %s2229_s21 }
 0x752   : > { %s2976_s15 = smov %s2218_s18  ;;  %16 = sbr.rel (!%p14_p0) target bundleno = 4 (0x4), region = 76 }
 0x757   :  { %1850 = vsyncpa [#allocation5], 1 }
 0x758   :  { %1852 = vsyncpa [#allocation5 + $0x1], 1 }
 0x759   :  { %1853 = vsyncpa [#allocation6], 1 }
 0x75a   :  { %1855 = vsyncpa [#allocation6 + $0x1], 1 }

</bundles_post_ra>
